<compile_context>
chip_gen: v7x
topology: tpu7x:2x2x1
jax: 0.10.0
libtpu: 0.0.40
codegen_flags: <defaults>
</compile_context>

<pallas_src>
import numpy as np

import jax
import jax.numpy as jnp
from jax.experimental import pallas as pl
from jax.experimental.pallas import tpu as pltpu


# ---------------------------------------------------------------------------
# Fused LeNet kernel (one image per grid step)
# ---------------------------------------------------------------------------
def _lenet_kernel(x_ref, r1_ref, r2_ref, wf1_ref, wf2_ref, wf3_ref,
                  b1_ref, b2_ref, bf1_ref, bf2_ref, bf3_ref,
                  o_ref, p1_ref, p2_ref):
    """Whole Net forward for one image.

    x_ref  : (1, 4, 8, 32) bf16  input rows pre-split by (row mod 4)
    r1_ref : (5, 32, 256)  bf16  conv1 shifted-weight RHS per kernel row
    r2_ref : (5, 128, 256) bf16  conv2 shifted-weight RHS per kernel row
    wf1_ref: (5, 128, 128) bf16  fc1 weights split per pooled row h
    wf2_ref, wf3_ref: (128, 128) bf16
    b*_ref : (1, 128) f32 biases tiled to the packed channel layouts
    o_ref  : (1, 1, 128) f32 logits (first 10 lanes real)
    p1_ref : (2, 7, 128) f32 scratch: pooled conv1 act, split by row parity
    p2_ref : (5, 128)    f32 scratch: pooled conv2 act
    """
    f32 = jnp.float32

    # ---- conv1 + bias + relu + 2x2/2 max-pool ------------------------------
    # p1_ref[par, q, c*14 + w] = pooled_conv1[c, 2q+par, w]
    for par in range(2):                    # parity of the pooled output row
        best = None
        for a in range(2):                  # pool row candidate
            acc = None
            for di in range(5):             # conv kernel row offset
                s = 2 * par + a + di        # raw input row = 4*q + s
                lhs = x_ref[0, s % 4, pl.ds(s // 4, 7), :]           # (7, 32)
                y = jnp.dot(lhs, r1_ref[di], preferred_element_type=f32)
                acc = y if acc is None else acc + y                  # (7, 256)
            cand = jnp.maximum(acc[:, :128], acc[:, 128:])   # column-pool pair
            best = cand if best is None else jnp.maximum(best, cand)
        # relu(max(.)+b) == maxpool(relu(.+b)): ReLU monotone, per-channel bias
        p1_ref[par] = jnp.maximum(best + b1_ref[...], 0.0)

    # ---- conv2 + bias + relu + 2x2/2 max-pool ------------------------------
    # p2_ref[p, o*5 + r] = pooled_conv2[o, p, r]
    best2 = None
    for a in range(2):
        acc = None
        for di in range(5):
            t = a + di                      # pooled conv1 row = 2*p + t
            lhs = p1_ref[t % 2, pl.ds(t // 2, 5), :].astype(jnp.bfloat16)
            y = jnp.dot(lhs, r2_ref[di], preferred_element_type=f32)
            acc = y if acc is None else acc + y                      # (5, 256)
        cand = jnp.maximum(acc[:, :128], acc[:, 128:])
        best2 = cand if best2 is None else jnp.maximum(best2, cand)
    p2_ref[...] = jnp.maximum(best2 + b2_ref[...], 0.0)

    # ---- fc1 (+relu) -> fc2 (+relu) -> fc3 ---------------------------------
    h = None
    for hh in range(5):                     # contract the pooled-row dim
        lhs = p2_ref[pl.ds(hh, 1), :].astype(jnp.bfloat16)           # (1, 128)
        y = jnp.dot(lhs, wf1_ref[hh], preferred_element_type=f32)
        h = y if h is None else h + y
    h = jnp.maximum(h + bf1_ref[...], 0.0)
    h = jnp.dot(h.astype(jnp.bfloat16), wf2_ref[...],
                preferred_element_type=f32)
    h = jnp.maximum(h + bf2_ref[...], 0.0)
    h = jnp.dot(h.astype(jnp.bfloat16), wf3_ref[...],
                preferred_element_type=f32)
    o_ref[0] = h + bf3_ref[...]


# ---------------------------------------------------------------------------
# Forward pass wrapper (single pallas_call)
# ---------------------------------------------------------------------------
def net_forward(prep, x):
    B, C, H, W = x.shape
    assert (C, H, W) == (1, 32, 32), "Net requires 1x32x32 inputs"
    # Split rows by (row mod 4) so every in-kernel conv LHS slab is a
    # contiguous ref slice (this also bakes in the 2x2 pool row subsampling).
    xs = (x[:, 0, :, :].reshape(B, 8, 4, 32).transpose(0, 2, 1, 3)
          .astype(jnp.bfloat16))                                    # (B,4,8,32)

    flops = B * (2 * 20 * 7 * 32 * 256      # conv1: 20 dots (7,32)@(32,256)
                 + 2 * 10 * 5 * 128 * 256   # conv2: 10 dots (5,128)@(128,256)
                 + 2 * 5 * 128 * 128        # fc1
                 + 2 * 2 * 128 * 128)       # fc2 + fc3
    bytes_accessed = (B * 4 * 8 * 32 * 2 + B * 128 * 4
                      + 2 * (5 * 32 * 256 + 5 * 128 * 256
                             + 5 * 128 * 128 + 2 * 128 * 128)
                      + 5 * 128 * 4)

    out = pl.pallas_call(
        _lenet_kernel,
        out_shape=jax.ShapeDtypeStruct((B, 1, 128), jnp.float32),
        grid=(B,),
        in_specs=[
            pl.BlockSpec((1, 4, 8, 32), lambda i: (i, 0, 0, 0)),
            pl.BlockSpec((5, 32, 256), lambda i: (0, 0, 0)),
            pl.BlockSpec((5, 128, 256), lambda i: (0, 0, 0)),
            pl.BlockSpec((5, 128, 128), lambda i: (0, 0, 0)),
            pl.BlockSpec((128, 128), lambda i: (0, 0)),
            pl.BlockSpec((128, 128), lambda i: (0, 0)),
            pl.BlockSpec((1, 128), lambda i: (0, 0)),
            pl.BlockSpec((1, 128), lambda i: (0, 0)),
            pl.BlockSpec((1, 128), lambda i: (0, 0)),
            pl.BlockSpec((1, 128), lambda i: (0, 0)),
            pl.BlockSpec((1, 128), lambda i: (0, 0)),
        ],
        out_specs=pl.BlockSpec((1, 1, 128), lambda i: (i, 0, 0)),
        scratch_shapes=[
            pltpu.VMEM((2, 7, 128), jnp.float32),   # pooled conv1 activation
            pltpu.VMEM((5, 128), jnp.float32),      # pooled conv2 activation
        ],
        compiler_params=pltpu.CompilerParams(
            dimension_semantics=("parallel",)),
        cost_estimate=pl.CostEstimate(
            flops=flops, transcendentals=0, bytes_accessed=bytes_accessed),
    )(xs, prep["r1"], prep["r2"], prep["wf1"], prep["wf2"], prep["wf3"],
      prep["b1"], prep["b2"], prep["bf1"], prep["bf2"], prep["bf3"])
    return out[:, 0, :10]


# ---------------------------------------------------------------------------
# Parameters: PyTorch layout at init, packed once for the kernel
# ---------------------------------------------------------------------------
def init_params(key):
    def uniform(key, shape, fan_in):
        bound = 1.0 / jnp.sqrt(fan_in)
        return jax.random.uniform(key, shape, jnp.float32, -bound, bound)

    keys = jax.random.split(key, 10)
    return {
        "conv1_w": uniform(keys[0], (6, 1, 5, 5), 1 * 5 * 5),
        "conv1_b": uniform(keys[1], (6,), 1 * 5 * 5),
        "conv2_w": uniform(keys[2], (16, 6, 5, 5), 6 * 5 * 5),
        "conv2_b": uniform(keys[3], (16,), 6 * 5 * 5),
        "fc1_w": uniform(keys[4], (120, 400), 400),
        "fc1_b": uniform(keys[5], (120,), 400),
        "fc2_w": uniform(keys[6], (84, 120), 120),
        "fc2_b": uniform(keys[7], (84,), 120),
        "fc3_w": uniform(keys[8], (10, 84), 84),
        "fc3_b": uniform(keys[9], (10,), 84),
    }


def prepare_params(params):
    """Pack PyTorch-layout params into the shifted-weight GEMM matrices.

    Runs once on the host (numpy); encodes the conv width window + the pool's
    column subsampling directly in the weight matrices so the kernel needs no
    im2col / strided access.
    """
    w1 = np.asarray(params["conv1_w"], np.float32)    # (6,1,5,5)
    b1 = np.asarray(params["conv1_b"], np.float32)
    w2 = np.asarray(params["conv2_w"], np.float32)    # (16,6,5,5)
    b2 = np.asarray(params["conv2_b"], np.float32)
    f1w = np.asarray(params["fc1_w"], np.float32)     # (120,400)
    f1b = np.asarray(params["fc1_b"], np.float32)
    f2w = np.asarray(params["fc2_w"], np.float32)     # (84,120)
    f2b = np.asarray(params["fc2_b"], np.float32)
    f3w = np.asarray(params["fc3_w"], np.float32)     # (10,84)
    f3b = np.asarray(params["fc3_b"], np.float32)

    # conv1 RHS: r1[di][j, bcol*128 + o*14 + r] = w1[o,0,di, j - (2r+bcol)]
    r1 = np.zeros((5, 32, 256), np.float32)
    for di in range(5):
        for bcol in range(2):
            for o in range(6):
                for r in range(14):
                    for dj in range(5):
                        r1[di, 2 * r + bcol + dj,
                           bcol * 128 + o * 14 + r] = w1[o, 0, di, dj]

    # conv2 RHS: r2[di][c*14 + j, bcol*128 + o*5 + r] = w2[o,c,di, j-(2r+bcol)]
    r2 = np.zeros((5, 128, 256), np.float32)
    for di in range(5):
        for bcol in range(2):
            for o in range(16):
                for r in range(5):
                    for c in range(6):
                        for dj in range(5):
                            r2[di, c * 14 + 2 * r + bcol + dj,
                               bcol * 128 + o * 5 + r] = w2[o, c, di, dj]

    # fc1 split per pooled row h; rows indexed by (o*5 + w) matching p2 layout.
    wf1 = np.zeros((5, 128, 128), np.float32)
    f1w_r = f1w.reshape(120, 16, 5, 5)
    for h in range(5):
        wf1[h, :80, :120] = f1w_r[:, :, h, :].reshape(120, 80).T

    wf2 = np.zeros((128, 128), np.float32)
    wf2[:120, :84] = f2w.T
    wf3 = np.zeros((128, 128), np.float32)
    wf3[:84, :10] = f3w.T

    def row128(v):
        out = np.zeros((1, 128), np.float32)
        out[0, :v.shape[0]] = v
        return out

    return {
        "r1": jnp.asarray(r1, jnp.bfloat16),
        "r2": jnp.asarray(r2, jnp.bfloat16),
        "wf1": jnp.asarray(wf1, jnp.bfloat16),
        "wf2": jnp.asarray(wf2, jnp.bfloat16),
        "wf3": jnp.asarray(wf3, jnp.bfloat16),
        "b1": jnp.asarray(row128(np.repeat(b1, 14))),   # lane o*14 + r
        "b2": jnp.asarray(row128(np.repeat(b2, 5))),    # lane o*5 + r
        "bf1": jnp.asarray(row128(f1b)),
        "bf2": jnp.asarray(row128(f2b)),
        "bf3": jnp.asarray(row128(f3b)),
    }


# ---------------------------------------------------------------------------
# Plain-JAX f32 reference (PyTorch-layout params) for a correctness check
# ---------------------------------------------------------------------------
def net_forward_reference(params, x):
    def conv(x, w, b):
        y = jax.lax.conv_general_dilated(
            x, w, window_strides=(1, 1), padding="VALID",
            dimension_numbers=("NCHW", "OIHW", "NCHW"))
        return y + b.reshape(1, -1, 1, 1)

    def pool(x):
        B, C, H, W = x.shape
        return x.reshape(B, C, H // 2, 2, W // 2, 2).max(axis=(3, 5))

    x = pool(jax.nn.relu(conv(x, params["conv1_w"], params["conv1_b"])))
    x = pool(jax.nn.relu(conv(x, params["conv2_w"], params["conv2_b"])))
    x = x.reshape(x.shape[0], -1)
    x = jax.nn.relu(x @ params["fc1_w"].T + params["fc1_b"])
    x = jax.nn.relu(x @ params["fc2_w"].T + params["fc2_b"])
    return x @ params["fc3_w"].T + params["fc3_b"]


if __name__ == "__main__":
    key = jax.random.PRNGKey(0)
    pkey, xkey = jax.random.split(key)
    params = init_params(pkey)
    prep = prepare_params(params)
    # Net requires 1x32x32 inputs (flatten hits 16*5*5 = 400).
    x = jax.random.normal(xkey, (2, 1, 32, 32), dtype=jnp.float32)

    out = jax.jit(net_forward)(prep, x)
    out = jax.block_until_ready(out)
    assert out.shape == (2, 10) and out.dtype == jnp.float32

    ref = net_forward_reference(params, x)
    max_err = float(jnp.max(jnp.abs(out - ref)))
    if not bool(jnp.allclose(out, ref, atol=3e-2, rtol=3e-2)):
        raise AssertionError(f"mismatch vs f32 reference, max abs err={max_err}")
    print("KERNEL_OK")
</pallas_src>

<mosaic_0001>
module attributes {stable_mosaic.version = 11 : i64} {
  func.func @_lenet_kernel(%arg0: i32, %arg1: memref<1x4x8x32xbf16, #tpu.memory_space<vmem>>, %arg2: memref<5x32x256xbf16, #tpu.memory_space<vmem>>, %arg3: memref<5x128x256xbf16, #tpu.memory_space<vmem>>, %arg4: memref<5x128x128xbf16, #tpu.memory_space<vmem>>, %arg5: memref<128x128xbf16, #tpu.memory_space<vmem>>, %arg6: memref<128x128xbf16, #tpu.memory_space<vmem>>, %arg7: memref<1x128xf32, #tpu.memory_space<vmem>>, %arg8: memref<1x128xf32, #tpu.memory_space<vmem>>, %arg9: memref<1x128xf32, #tpu.memory_space<vmem>>, %arg10: memref<1x128xf32, #tpu.memory_space<vmem>>, %arg11: memref<1x128xf32, #tpu.memory_space<vmem>>, %arg12: memref<1x1x128xf32, #tpu.memory_space<vmem>>, %arg13: memref<2x7x128xf32, #tpu.memory_space<vmem>>, %arg14: memref<5x128xf32, #tpu.memory_space<vmem>>) attributes {dimension_semantics = [#tpu.dimension_semantics<parallel>], iteration_bounds = array<i64: 2>, scalar_prefetch = 0 : i64, scratch_operands = 2 : i64, tpu.core_type = #tpu.core_type<tc>, window_params = [{transform_indices = @transform_0, window_bounds = array<i64: 1, 4, 8, 32>}, {pipeline_mode = #tpu.pipeline_mode<synchronous>, transform_indices = @transform_1, window_bounds = array<i64: 5, 32, 256>}, {pipeline_mode = #tpu.pipeline_mode<synchronous>, transform_indices = @transform_2, window_bounds = array<i64: 5, 128, 256>}, {pipeline_mode = #tpu.pipeline_mode<synchronous>, transform_indices = @transform_3, window_bounds = array<i64: 5, 128, 128>}, {pipeline_mode = #tpu.pipeline_mode<synchronous>, transform_indices = @transform_4, window_bounds = array<i64: 128, 128>}, {pipeline_mode = #tpu.pipeline_mode<synchronous>, transform_indices = @transform_5, window_bounds = array<i64: 128, 128>}, {pipeline_mode = #tpu.pipeline_mode<synchronous>, transform_indices = @transform_6, window_bounds = array<i64: 1, 128>}, {pipeline_mode = #tpu.pipeline_mode<synchronous>, transform_indices = @transform_7, window_bounds = array<i64: 1, 128>}, {pipeline_mode = #tpu.pipeline_mode<synchronous>, transform_indices = @transform_8, window_bounds = array<i64: 1, 128>}, {pipeline_mode = #tpu.pipeline_mode<synchronous>, transform_indices = @transform_9, window_bounds = array<i64: 1, 128>}, {pipeline_mode = #tpu.pipeline_mode<synchronous>, transform_indices = @transform_10, window_bounds = array<i64: 1, 128>}, {transform_indices = @transform_11, window_bounds = array<i64: 1, 1, 128>}]} {
    %c0 = arith.constant 0 : index
    %c0_0 = arith.constant 0 : index
    %c0_1 = arith.constant 0 : index
    %c0_2 = arith.constant 0 : index
    %0 = vector.load %arg1[%c0, %c0_0, %c0_1, %c0_2] : memref<1x4x8x32xbf16, #tpu.memory_space<vmem>>, vector<1x1x7x32xbf16>
    %1 = vector.shape_cast %0 : vector<1x1x7x32xbf16> to vector<7x32xbf16>
    %c0_3 = arith.constant 0 : index
    %c0_4 = arith.constant 0 : index
    %c0_5 = arith.constant 0 : index
    %2 = vector.load %arg2[%c0_3, %c0_4, %c0_5] : memref<5x32x256xbf16, #tpu.memory_space<vmem>>, vector<1x32x256xbf16>
    %3 = vector.shape_cast %2 : vector<1x32x256xbf16> to vector<32x256xbf16>
    %cst = arith.constant dense<0.000000e+00> : vector<7x256xf32>
    %4 = tpu.matmul %1, %3, %cst {dimension_numbers = #tpu.dot_dimension_numbers<[1], [0], [0], [1], [0, 0, 1, 1], [], []>} : vector<7x32xbf16>, vector<32x256xbf16>, vector<7x256xf32> -> vector<7x256xf32>
    %c0_6 = arith.constant 0 : index
    %c1 = arith.constant 1 : index
    %c0_7 = arith.constant 0 : index
    %c0_8 = arith.constant 0 : index
    %5 = vector.load %arg1[%c0_6, %c1, %c0_7, %c0_8] : memref<1x4x8x32xbf16, #tpu.memory_space<vmem>>, vector<1x1x7x32xbf16>
    %6 = vector.shape_cast %5 : vector<1x1x7x32xbf16> to vector<7x32xbf16>
    %c1_9 = arith.constant 1 : index
    %c0_10 = arith.constant 0 : index
    %c0_11 = arith.constant 0 : index
    %7 = vector.load %arg2[%c1_9, %c0_10, %c0_11] : memref<5x32x256xbf16, #tpu.memory_space<vmem>>, vector<1x32x256xbf16>
    %8 = vector.shape_cast %7 : vector<1x32x256xbf16> to vector<32x256xbf16>
    %cst_12 = arith.constant dense<0.000000e+00> : vector<7x256xf32>
    %9 = tpu.matmul %6, %8, %cst_12 {dimension_numbers = #tpu.dot_dimension_numbers<[1], [0], [0], [1], [0, 0, 1, 1], [], []>} : vector<7x32xbf16>, vector<32x256xbf16>, vector<7x256xf32> -> vector<7x256xf32>
    %10 = arith.addf %4, %9 : vector<7x256xf32>
    %c0_13 = arith.constant 0 : index
    %c2 = arith.constant 2 : index
    %c0_14 = arith.constant 0 : index
    %c0_15 = arith.constant 0 : index
    %11 = vector.load %arg1[%c0_13, %c2, %c0_14, %c0_15] : memref<1x4x8x32xbf16, #tpu.memory_space<vmem>>, vector<1x1x7x32xbf16>
    %12 = vector.shape_cast %11 : vector<1x1x7x32xbf16> to vector<7x32xbf16>
    %c2_16 = arith.constant 2 : index
    %c0_17 = arith.constant 0 : index
    %c0_18 = arith.constant 0 : index
    %13 = vector.load %arg2[%c2_16, %c0_17, %c0_18] : memref<5x32x256xbf16, #tpu.memory_space<vmem>>, vector<1x32x256xbf16>
    %14 = vector.shape_cast %13 : vector<1x32x256xbf16> to vector<32x256xbf16>
    %cst_19 = arith.constant dense<0.000000e+00> : vector<7x256xf32>
    %15 = tpu.matmul %12, %14, %cst_19 {dimension_numbers = #tpu.dot_dimension_numbers<[1], [0], [0], [1], [0, 0, 1, 1], [], []>} : vector<7x32xbf16>, vector<32x256xbf16>, vector<7x256xf32> -> vector<7x256xf32>
    %16 = arith.addf %10, %15 : vector<7x256xf32>
    %c0_20 = arith.constant 0 : index
    %c3 = arith.constant 3 : index
    %c0_21 = arith.constant 0 : index
    %c0_22 = arith.constant 0 : index
    %17 = vector.load %arg1[%c0_20, %c3, %c0_21, %c0_22] : memref<1x4x8x32xbf16, #tpu.memory_space<vmem>>, vector<1x1x7x32xbf16>
    %18 = vector.shape_cast %17 : vector<1x1x7x32xbf16> to vector<7x32xbf16>
    %c3_23 = arith.constant 3 : index
    %c0_24 = arith.constant 0 : index
    %c0_25 = arith.constant 0 : index
    %19 = vector.load %arg2[%c3_23, %c0_24, %c0_25] : memref<5x32x256xbf16, #tpu.memory_space<vmem>>, vector<1x32x256xbf16>
    %20 = vector.shape_cast %19 : vector<1x32x256xbf16> to vector<32x256xbf16>
    %cst_26 = arith.constant dense<0.000000e+00> : vector<7x256xf32>
    %21 = tpu.matmul %18, %20, %cst_26 {dimension_numbers = #tpu.dot_dimension_numbers<[1], [0], [0], [1], [0, 0, 1, 1], [], []>} : vector<7x32xbf16>, vector<32x256xbf16>, vector<7x256xf32> -> vector<7x256xf32>
    %22 = arith.addf %16, %21 : vector<7x256xf32>
    %c0_27 = arith.constant 0 : index
    %c0_28 = arith.constant 0 : index
    %c1_29 = arith.constant 1 : index
    %c0_30 = arith.constant 0 : index
    %23 = vector.load %arg1[%c0_27, %c0_28, %c1_29, %c0_30] : memref<1x4x8x32xbf16, #tpu.memory_space<vmem>>, vector<1x1x7x32xbf16>
    %24 = vector.shape_cast %23 : vector<1x1x7x32xbf16> to vector<7x32xbf16>
    %c4 = arith.constant 4 : index
    %c0_31 = arith.constant 0 : index
    %c0_32 = arith.constant 0 : index
    %25 = vector.load %arg2[%c4, %c0_31, %c0_32] : memref<5x32x256xbf16, #tpu.memory_space<vmem>>, vector<1x32x256xbf16>
    %26 = vector.shape_cast %25 : vector<1x32x256xbf16> to vector<32x256xbf16>
    %cst_33 = arith.constant dense<0.000000e+00> : vector<7x256xf32>
    %27 = tpu.matmul %24, %26, %cst_33 {dimension_numbers = #tpu.dot_dimension_numbers<[1], [0], [0], [1], [0, 0, 1, 1], [], []>} : vector<7x32xbf16>, vector<32x256xbf16>, vector<7x256xf32> -> vector<7x256xf32>
    %28 = arith.addf %22, %27 : vector<7x256xf32>
    %29 = vector.extract_strided_slice %28 {offsets = [0, 0], sizes = [7, 128], strides = [1, 1]} : vector<7x256xf32> to vector<7x128xf32>
    %30 = vector.extract_strided_slice %28 {offsets = [0, 128], sizes = [7, 128], strides = [1, 1]} : vector<7x256xf32> to vector<7x128xf32>
    %31 = arith.maximumf %29, %30 : vector<7x128xf32>
    %c0_34 = arith.constant 0 : index
    %c1_35 = arith.constant 1 : index
    %c0_36 = arith.constant 0 : index
    %c0_37 = arith.constant 0 : index
    %32 = vector.load %arg1[%c0_34, %c1_35, %c0_36, %c0_37] : memref<1x4x8x32xbf16, #tpu.memory_space<vmem>>, vector<1x1x7x32xbf16>
    %33 = vector.shape_cast %32 : vector<1x1x7x32xbf16> to vector<7x32xbf16>
    %c0_38 = arith.constant 0 : index
    %c0_39 = arith.constant 0 : index
    %c0_40 = arith.constant 0 : index
    %34 = vector.load %arg2[%c0_38, %c0_39, %c0_40] : memref<5x32x256xbf16, #tpu.memory_space<vmem>>, vector<1x32x256xbf16>
    %35 = vector.shape_cast %34 : vector<1x32x256xbf16> to vector<32x256xbf16>
    %cst_41 = arith.constant dense<0.000000e+00> : vector<7x256xf32>
    %36 = tpu.matmul %33, %35, %cst_41 {dimension_numbers = #tpu.dot_dimension_numbers<[1], [0], [0], [1], [0, 0, 1, 1], [], []>} : vector<7x32xbf16>, vector<32x256xbf16>, vector<7x256xf32> -> vector<7x256xf32>
    %c0_42 = arith.constant 0 : index
    %c2_43 = arith.constant 2 : index
    %c0_44 = arith.constant 0 : index
    %c0_45 = arith.constant 0 : index
    %37 = vector.load %arg1[%c0_42, %c2_43, %c0_44, %c0_45] : memref<1x4x8x32xbf16, #tpu.memory_space<vmem>>, vector<1x1x7x32xbf16>
    %38 = vector.shape_cast %37 : vector<1x1x7x32xbf16> to vector<7x32xbf16>
    %c1_46 = arith.constant 1 : index
    %c0_47 = arith.constant 0 : index
    %c0_48 = arith.constant 0 : index
    %39 = vector.load %arg2[%c1_46, %c0_47, %c0_48] : memref<5x32x256xbf16, #tpu.memory_space<vmem>>, vector<1x32x256xbf16>
    %40 = vector.shape_cast %39 : vector<1x32x256xbf16> to vector<32x256xbf16>
    %cst_49 = arith.constant dense<0.000000e+00> : vector<7x256xf32>
    %41 = tpu.matmul %38, %40, %cst_49 {dimension_numbers = #tpu.dot_dimension_numbers<[1], [0], [0], [1], [0, 0, 1, 1], [], []>} : vector<7x32xbf16>, vector<32x256xbf16>, vector<7x256xf32> -> vector<7x256xf32>
    %42 = arith.addf %36, %41 : vector<7x256xf32>
    %c0_50 = arith.constant 0 : index
    %c3_51 = arith.constant 3 : index
    %c0_52 = arith.constant 0 : index
    %c0_53 = arith.constant 0 : index
    %43 = vector.load %arg1[%c0_50, %c3_51, %c0_52, %c0_53] : memref<1x4x8x32xbf16, #tpu.memory_space<vmem>>, vector<1x1x7x32xbf16>
    %44 = vector.shape_cast %43 : vector<1x1x7x32xbf16> to vector<7x32xbf16>
    %c2_54 = arith.constant 2 : index
    %c0_55 = arith.constant 0 : index
    %c0_56 = arith.constant 0 : index
    %45 = vector.load %arg2[%c2_54, %c0_55, %c0_56] : memref<5x32x256xbf16, #tpu.memory_space<vmem>>, vector<1x32x256xbf16>
    %46 = vector.shape_cast %45 : vector<1x32x256xbf16> to vector<32x256xbf16>
    %cst_57 = arith.constant dense<0.000000e+00> : vector<7x256xf32>
    %47 = tpu.matmul %44, %46, %cst_57 {dimension_numbers = #tpu.dot_dimension_numbers<[1], [0], [0], [1], [0, 0, 1, 1], [], []>} : vector<7x32xbf16>, vector<32x256xbf16>, vector<7x256xf32> -> vector<7x256xf32>
    %48 = arith.addf %42, %47 : vector<7x256xf32>
    %c0_58 = arith.constant 0 : index
    %c0_59 = arith.constant 0 : index
    %c1_60 = arith.constant 1 : index
    %c0_61 = arith.constant 0 : index
    %49 = vector.load %arg1[%c0_58, %c0_59, %c1_60, %c0_61] : memref<1x4x8x32xbf16, #tpu.memory_space<vmem>>, vector<1x1x7x32xbf16>
    %50 = vector.shape_cast %49 : vector<1x1x7x32xbf16> to vector<7x32xbf16>
    %c3_62 = arith.constant 3 : index
    %c0_63 = arith.constant 0 : index
    %c0_64 = arith.constant 0 : index
    %51 = vector.load %arg2[%c3_62, %c0_63, %c0_64] : memref<5x32x256xbf16, #tpu.memory_space<vmem>>, vector<1x32x256xbf16>
    %52 = vector.shape_cast %51 : vector<1x32x256xbf16> to vector<32x256xbf16>
    %cst_65 = arith.constant dense<0.000000e+00> : vector<7x256xf32>
    %53 = tpu.matmul %50, %52, %cst_65 {dimension_numbers = #tpu.dot_dimension_numbers<[1], [0], [0], [1], [0, 0, 1, 1], [], []>} : vector<7x32xbf16>, vector<32x256xbf16>, vector<7x256xf32> -> vector<7x256xf32>
    %54 = arith.addf %48, %53 : vector<7x256xf32>
    %c0_66 = arith.constant 0 : index
    %c1_67 = arith.constant 1 : index
    %c1_68 = arith.constant 1 : index
    %c0_69 = arith.constant 0 : index
    %55 = vector.load %arg1[%c0_66, %c1_67, %c1_68, %c0_69] : memref<1x4x8x32xbf16, #tpu.memory_space<vmem>>, vector<1x1x7x32xbf16>
    %56 = vector.shape_cast %55 : vector<1x1x7x32xbf16> to vector<7x32xbf16>
    %c4_70 = arith.constant 4 : index
    %c0_71 = arith.constant 0 : index
    %c0_72 = arith.constant 0 : index
    %57 = vector.load %arg2[%c4_70, %c0_71, %c0_72] : memref<5x32x256xbf16, #tpu.memory_space<vmem>>, vector<1x32x256xbf16>
    %58 = vector.shape_cast %57 : vector<1x32x256xbf16> to vector<32x256xbf16>
    %cst_73 = arith.constant dense<0.000000e+00> : vector<7x256xf32>
    %59 = tpu.matmul %56, %58, %cst_73 {dimension_numbers = #tpu.dot_dimension_numbers<[1], [0], [0], [1], [0, 0, 1, 1], [], []>} : vector<7x32xbf16>, vector<32x256xbf16>, vector<7x256xf32> -> vector<7x256xf32>
    %60 = arith.addf %54, %59 : vector<7x256xf32>
    %61 = vector.extract_strided_slice %60 {offsets = [0, 0], sizes = [7, 128], strides = [1, 1]} : vector<7x256xf32> to vector<7x128xf32>
    %62 = vector.extract_strided_slice %60 {offsets = [0, 128], sizes = [7, 128], strides = [1, 1]} : vector<7x256xf32> to vector<7x128xf32>
    %63 = arith.maximumf %61, %62 : vector<7x128xf32>
    %64 = arith.maximumf %31, %63 : vector<7x128xf32>
    %c0_74 = arith.constant 0 : index
    %c0_75 = arith.constant 0 : index
    %65 = vector.load %arg7[%c0_74, %c0_75] : memref<1x128xf32, #tpu.memory_space<vmem>>, vector<1x128xf32>
    %66 = vector.broadcast %65 : vector<1x128xf32> to vector<7x128xf32>
    %67 = arith.addf %64, %66 : vector<7x128xf32>
    %cst_76 = arith.constant 0.000000e+00 : f32
    %68 = vector.broadcast %cst_76 : f32 to vector<7x128xf32>
    %69 = arith.maximumf %67, %68 : vector<7x128xf32>
    %c0_77 = arith.constant 0 : index
    %c0_78 = arith.constant 0 : index
    %c0_79 = arith.constant 0 : index
    %70 = vector.load %arg13[%c0_77, %c0_78, %c0_79] : memref<2x7x128xf32, #tpu.memory_space<vmem>>, vector<1x7x128xf32>
    %71 = vector.shape_cast %70 : vector<1x7x128xf32> to vector<7x128xf32>
    %72 = vector.shape_cast %69 : vector<7x128xf32> to vector<1x7x128xf32>
    tpu.vector_store %arg13[%c0_77, %c0_78, %c0_79], %72 {strides = array<i32>} : memref<2x7x128xf32, #tpu.memory_space<vmem>>, vector<1x7x128xf32>,
    %c0_80 = arith.constant 0 : index
    %c2_81 = arith.constant 2 : index
    %c0_82 = arith.constant 0 : index
    %c0_83 = arith.constant 0 : index
    %73 = vector.load %arg1[%c0_80, %c2_81, %c0_82, %c0_83] : memref<1x4x8x32xbf16, #tpu.memory_space<vmem>>, vector<1x1x7x32xbf16>
    %74 = vector.shape_cast %73 : vector<1x1x7x32xbf16> to vector<7x32xbf16>
    %c0_84 = arith.constant 0 : index
    %c0_85 = arith.constant 0 : index
    %c0_86 = arith.constant 0 : index
    %75 = vector.load %arg2[%c0_84, %c0_85, %c0_86] : memref<5x32x256xbf16, #tpu.memory_space<vmem>>, vector<1x32x256xbf16>
    %76 = vector.shape_cast %75 : vector<1x32x256xbf16> to vector<32x256xbf16>
    %cst_87 = arith.constant dense<0.000000e+00> : vector<7x256xf32>
    %77 = tpu.matmul %74, %76, %cst_87 {dimension_numbers = #tpu.dot_dimension_numbers<[1], [0], [0], [1], [0, 0, 1, 1], [], []>} : vector<7x32xbf16>, vector<32x256xbf16>, vector<7x256xf32> -> vector<7x256xf32>
    %c0_88 = arith.constant 0 : index
    %c3_89 = arith.constant 3 : index
    %c0_90 = arith.constant 0 : index
    %c0_91 = arith.constant 0 : index
    %78 = vector.load %arg1[%c0_88, %c3_89, %c0_90, %c0_91] : memref<1x4x8x32xbf16, #tpu.memory_space<vmem>>, vector<1x1x7x32xbf16>
    %79 = vector.shape_cast %78 : vector<1x1x7x32xbf16> to vector<7x32xbf16>
    %c1_92 = arith.constant 1 : index
    %c0_93 = arith.constant 0 : index
    %c0_94 = arith.constant 0 : index
    %80 = vector.load %arg2[%c1_92, %c0_93, %c0_94] : memref<5x32x256xbf16, #tpu.memory_space<vmem>>, vector<1x32x256xbf16>
    %81 = vector.shape_cast %80 : vector<1x32x256xbf16> to vector<32x256xbf16>
    %cst_95 = arith.constant dense<0.000000e+00> : vector<7x256xf32>
    %82 = tpu.matmul %79, %81, %cst_95 {dimension_numbers = #tpu.dot_dimension_numbers<[1], [0], [0], [1], [0, 0, 1, 1], [], []>} : vector<7x32xbf16>, vector<32x256xbf16>, vector<7x256xf32> -> vector<7x256xf32>
    %83 = arith.addf %77, %82 : vector<7x256xf32>
    %c0_96 = arith.constant 0 : index
    %c0_97 = arith.constant 0 : index
    %c1_98 = arith.constant 1 : index
    %c0_99 = arith.constant 0 : index
    %84 = vector.load %arg1[%c0_96, %c0_97, %c1_98, %c0_99] : memref<1x4x8x32xbf16, #tpu.memory_space<vmem>>, vector<1x1x7x32xbf16>
    %85 = vector.shape_cast %84 : vector<1x1x7x32xbf16> to vector<7x32xbf16>
    %c2_100 = arith.constant 2 : index
    %c0_101 = arith.constant 0 : index
    %c0_102 = arith.constant 0 : index
    %86 = vector.load %arg2[%c2_100, %c0_101, %c0_102] : memref<5x32x256xbf16, #tpu.memory_space<vmem>>, vector<1x32x256xbf16>
    %87 = vector.shape_cast %86 : vector<1x32x256xbf16> to vector<32x256xbf16>
    %cst_103 = arith.constant dense<0.000000e+00> : vector<7x256xf32>
    %88 = tpu.matmul %85, %87, %cst_103 {dimension_numbers = #tpu.dot_dimension_numbers<[1], [0], [0], [1], [0, 0, 1, 1], [], []>} : vector<7x32xbf16>, vector<32x256xbf16>, vector<7x256xf32> -> vector<7x256xf32>
    %89 = arith.addf %83, %88 : vector<7x256xf32>
    %c0_104 = arith.constant 0 : index
    %c1_105 = arith.constant 1 : index
    %c1_106 = arith.constant 1 : index
    %c0_107 = arith.constant 0 : index
    %90 = vector.load %arg1[%c0_104, %c1_105, %c1_106, %c0_107] : memref<1x4x8x32xbf16, #tpu.memory_space<vmem>>, vector<1x1x7x32xbf16>
    %91 = vector.shape_cast %90 : vector<1x1x7x32xbf16> to vector<7x32xbf16>
    %c3_108 = arith.constant 3 : index
    %c0_109 = arith.constant 0 : index
    %c0_110 = arith.constant 0 : index
    %92 = vector.load %arg2[%c3_108, %c0_109, %c0_110] : memref<5x32x256xbf16, #tpu.memory_space<vmem>>, vector<1x32x256xbf16>
    %93 = vector.shape_cast %92 : vector<1x32x256xbf16> to vector<32x256xbf16>
    %cst_111 = arith.constant dense<0.000000e+00> : vector<7x256xf32>
    %94 = tpu.matmul %91, %93, %cst_111 {dimension_numbers = #tpu.dot_dimension_numbers<[1], [0], [0], [1], [0, 0, 1, 1], [], []>} : vector<7x32xbf16>, vector<32x256xbf16>, vector<7x256xf32> -> vector<7x256xf32>
    %95 = arith.addf %89, %94 : vector<7x256xf32>
    %c0_112 = arith.constant 0 : index
    %c2_113 = arith.constant 2 : index
    %c1_114 = arith.constant 1 : index
    %c0_115 = arith.constant 0 : index
    %96 = vector.load %arg1[%c0_112, %c2_113, %c1_114, %c0_115] : memref<1x4x8x32xbf16, #tpu.memory_space<vmem>>, vector<1x1x7x32xbf16>
    %97 = vector.shape_cast %96 : vector<1x1x7x32xbf16> to vector<7x32xbf16>
    %c4_116 = arith.constant 4 : index
    %c0_117 = arith.constant 0 : index
    %c0_118 = arith.constant 0 : index
    %98 = vector.load %arg2[%c4_116, %c0_117, %c0_118] : memref<5x32x256xbf16, #tpu.memory_space<vmem>>, vector<1x32x256xbf16>
    %99 = vector.shape_cast %98 : vector<1x32x256xbf16> to vector<32x256xbf16>
    %cst_119 = arith.constant dense<0.000000e+00> : vector<7x256xf32>
    %100 = tpu.matmul %97, %99, %cst_119 {dimension_numbers = #tpu.dot_dimension_numbers<[1], [0], [0], [1], [0, 0, 1, 1], [], []>} : vector<7x32xbf16>, vector<32x256xbf16>, vector<7x256xf32> -> vector<7x256xf32>
    %101 = arith.addf %95, %100 : vector<7x256xf32>
    %102 = vector.extract_strided_slice %101 {offsets = [0, 0], sizes = [7, 128], strides = [1, 1]} : vector<7x256xf32> to vector<7x128xf32>
    %103 = vector.extract_strided_slice %101 {offsets = [0, 128], sizes = [7, 128], strides = [1, 1]} : vector<7x256xf32> to vector<7x128xf32>
    %104 = arith.maximumf %102, %103 : vector<7x128xf32>
    %c0_120 = arith.constant 0 : index
    %c3_121 = arith.constant 3 : index
    %c0_122 = arith.constant 0 : index
    %c0_123 = arith.constant 0 : index
    %105 = vector.load %arg1[%c0_120, %c3_121, %c0_122, %c0_123] : memref<1x4x8x32xbf16, #tpu.memory_space<vmem>>, vector<1x1x7x32xbf16>
    %106 = vector.shape_cast %105 : vector<1x1x7x32xbf16> to vector<7x32xbf16>
    %c0_124 = arith.constant 0 : index
    %c0_125 = arith.constant 0 : index
    %c0_126 = arith.constant 0 : index
    %107 = vector.load %arg2[%c0_124, %c0_125, %c0_126] : memref<5x32x256xbf16, #tpu.memory_space<vmem>>, vector<1x32x256xbf16>
    %108 = vector.shape_cast %107 : vector<1x32x256xbf16> to vector<32x256xbf16>
    %cst_127 = arith.constant dense<0.000000e+00> : vector<7x256xf32>
    %109 = tpu.matmul %106, %108, %cst_127 {dimension_numbers = #tpu.dot_dimension_numbers<[1], [0], [0], [1], [0, 0, 1, 1], [], []>} : vector<7x32xbf16>, vector<32x256xbf16>, vector<7x256xf32> -> vector<7x256xf32>
    %c0_128 = arith.constant 0 : index
    %c0_129 = arith.constant 0 : index
    %c1_130 = arith.constant 1 : index
    %c0_131 = arith.constant 0 : index
    %110 = vector.load %arg1[%c0_128, %c0_129, %c1_130, %c0_131] : memref<1x4x8x32xbf16, #tpu.memory_space<vmem>>, vector<1x1x7x32xbf16>
    %111 = vector.shape_cast %110 : vector<1x1x7x32xbf16> to vector<7x32xbf16>
    %c1_132 = arith.constant 1 : index
    %c0_133 = arith.constant 0 : index
    %c0_134 = arith.constant 0 : index
    %112 = vector.load %arg2[%c1_132, %c0_133, %c0_134] : memref<5x32x256xbf16, #tpu.memory_space<vmem>>, vector<1x32x256xbf16>
    %113 = vector.shape_cast %112 : vector<1x32x256xbf16> to vector<32x256xbf16>
    %cst_135 = arith.constant dense<0.000000e+00> : vector<7x256xf32>
    %114 = tpu.matmul %111, %113, %cst_135 {dimension_numbers = #tpu.dot_dimension_numbers<[1], [0], [0], [1], [0, 0, 1, 1], [], []>} : vector<7x32xbf16>, vector<32x256xbf16>, vector<7x256xf32> -> vector<7x256xf32>
    %115 = arith.addf %109, %114 : vector<7x256xf32>
    %c0_136 = arith.constant 0 : index
    %c1_137 = arith.constant 1 : index
    %c1_138 = arith.constant 1 : index
    %c0_139 = arith.constant 0 : index
    %116 = vector.load %arg1[%c0_136, %c1_137, %c1_138, %c0_139] : memref<1x4x8x32xbf16, #tpu.memory_space<vmem>>, vector<1x1x7x32xbf16>
    %117 = vector.shape_cast %116 : vector<1x1x7x32xbf16> to vector<7x32xbf16>
    %c2_140 = arith.constant 2 : index
    %c0_141 = arith.constant 0 : index
    %c0_142 = arith.constant 0 : index
    %118 = vector.load %arg2[%c2_140, %c0_141, %c0_142] : memref<5x32x256xbf16, #tpu.memory_space<vmem>>, vector<1x32x256xbf16>
    %119 = vector.shape_cast %118 : vector<1x32x256xbf16> to vector<32x256xbf16>
    %cst_143 = arith.constant dense<0.000000e+00> : vector<7x256xf32>
    %120 = tpu.matmul %117, %119, %cst_143 {dimension_numbers = #tpu.dot_dimension_numbers<[1], [0], [0], [1], [0, 0, 1, 1], [], []>} : vector<7x32xbf16>, vector<32x256xbf16>, vector<7x256xf32> -> vector<7x256xf32>
    %121 = arith.addf %115, %120 : vector<7x256xf32>
    %c0_144 = arith.constant 0 : index
    %c2_145 = arith.constant 2 : index
    %c1_146 = arith.constant 1 : index
    %c0_147 = arith.constant 0 : index
    %122 = vector.load %arg1[%c0_144, %c2_145, %c1_146, %c0_147] : memref<1x4x8x32xbf16, #tpu.memory_space<vmem>>, vector<1x1x7x32xbf16>
    %123 = vector.shape_cast %122 : vector<1x1x7x32xbf16> to vector<7x32xbf16>
    %c3_148 = arith.constant 3 : index
    %c0_149 = arith.constant 0 : index
    %c0_150 = arith.constant 0 : index
    %124 = vector.load %arg2[%c3_148, %c0_149, %c0_150] : memref<5x32x256xbf16, #tpu.memory_space<vmem>>, vector<1x32x256xbf16>
    %125 = vector.shape_cast %124 : vector<1x32x256xbf16> to vector<32x256xbf16>
    %cst_151 = arith.constant dense<0.000000e+00> : vector<7x256xf32>
    %126 = tpu.matmul %123, %125, %cst_151 {dimension_numbers = #tpu.dot_dimension_numbers<[1], [0], [0], [1], [0, 0, 1, 1], [], []>} : vector<7x32xbf16>, vector<32x256xbf16>, vector<7x256xf32> -> vector<7x256xf32>
    %127 = arith.addf %121, %126 : vector<7x256xf32>
    %c0_152 = arith.constant 0 : index
    %c3_153 = arith.constant 3 : index
    %c1_154 = arith.constant 1 : index
    %c0_155 = arith.constant 0 : index
    %128 = vector.load %arg1[%c0_152, %c3_153, %c1_154, %c0_155] : memref<1x4x8x32xbf16, #tpu.memory_space<vmem>>, vector<1x1x7x32xbf16>
    %129 = vector.shape_cast %128 : vector<1x1x7x32xbf16> to vector<7x32xbf16>
    %c4_156 = arith.constant 4 : index
    %c0_157 = arith.constant 0 : index
    %c0_158 = arith.constant 0 : index
    %130 = vector.load %arg2[%c4_156, %c0_157, %c0_158] : memref<5x32x256xbf16, #tpu.memory_space<vmem>>, vector<1x32x256xbf16>
    %131 = vector.shape_cast %130 : vector<1x32x256xbf16> to vector<32x256xbf16>
    %cst_159 = arith.constant dense<0.000000e+00> : vector<7x256xf32>
    %132 = tpu.matmul %129, %131, %cst_159 {dimension_numbers = #tpu.dot_dimension_numbers<[1], [0], [0], [1], [0, 0, 1, 1], [], []>} : vector<7x32xbf16>, vector<32x256xbf16>, vector<7x256xf32> -> vector<7x256xf32>
    %133 = arith.addf %127, %132 : vector<7x256xf32>
    %134 = vector.extract_strided_slice %133 {offsets = [0, 0], sizes = [7, 128], strides = [1, 1]} : vector<7x256xf32> to vector<7x128xf32>
    %135 = vector.extract_strided_slice %133 {offsets = [0, 128], sizes = [7, 128], strides = [1, 1]} : vector<7x256xf32> to vector<7x128xf32>
    %136 = arith.maximumf %134, %135 : vector<7x128xf32>
    %137 = arith.maximumf %104, %136 : vector<7x128xf32>
    %c0_160 = arith.constant 0 : index
    %c0_161 = arith.constant 0 : index
    %138 = vector.load %arg7[%c0_160, %c0_161] : memref<1x128xf32, #tpu.memory_space<vmem>>, vector<1x128xf32>
    %139 = vector.broadcast %138 : vector<1x128xf32> to vector<7x128xf32>
    %140 = arith.addf %137, %139 : vector<7x128xf32>
    %cst_162 = arith.constant 0.000000e+00 : f32
    %141 = vector.broadcast %cst_162 : f32 to vector<7x128xf32>
    %142 = arith.maximumf %140, %141 : vector<7x128xf32>
    %c1_163 = arith.constant 1 : index
    %c0_164 = arith.constant 0 : index
    %c0_165 = arith.constant 0 : index
    %143 = vector.load %arg13[%c1_163, %c0_164, %c0_165] : memref<2x7x128xf32, #tpu.memory_space<vmem>>, vector<1x7x128xf32>
    %144 = vector.shape_cast %143 : vector<1x7x128xf32> to vector<7x128xf32>
    %145 = vector.shape_cast %142 : vector<7x128xf32> to vector<1x7x128xf32>
    tpu.vector_store %arg13[%c1_163, %c0_164, %c0_165], %145 {strides = array<i32>} : memref<2x7x128xf32, #tpu.memory_space<vmem>>, vector<1x7x128xf32>,
    %c0_166 = arith.constant 0 : index
    %c0_167 = arith.constant 0 : index
    %c0_168 = arith.constant 0 : index
    %146 = vector.load %arg13[%c0_166, %c0_167, %c0_168] : memref<2x7x128xf32, #tpu.memory_space<vmem>>, vector<1x5x128xf32>
    %147 = vector.shape_cast %146 : vector<1x5x128xf32> to vector<5x128xf32>
    %148 = arith.truncf %147 : vector<5x128xf32> to vector<5x128xbf16>
    %c0_169 = arith.constant 0 : index
    %c0_170 = arith.constant 0 : index
    %c0_171 = arith.constant 0 : index
    %149 = vector.load %arg3[%c0_169, %c0_170, %c0_171] : memref<5x128x256xbf16, #tpu.memory_space<vmem>>, vector<1x128x256xbf16>
    %150 = vector.shape_cast %149 : vector<1x128x256xbf16> to vector<128x256xbf16>
    %cst_172 = arith.constant dense<0.000000e+00> : vector<5x256xf32>
    %151 = tpu.matmul %148, %150, %cst_172 {dimension_numbers = #tpu.dot_dimension_numbers<[1], [0], [0], [1], [0, 0, 1, 1], [], []>} : vector<5x128xbf16>, vector<128x256xbf16>, vector<5x256xf32> -> vector<5x256xf32>
    %c1_173 = arith.constant 1 : index
    %c0_174 = arith.constant 0 : index
    %c0_175 = arith.constant 0 : index
    %152 = vector.load %arg13[%c1_173, %c0_174, %c0_175] : memref<2x7x128xf32, #tpu.memory_space<vmem>>, vector<1x5x128xf32>
    %153 = vector.shape_cast %152 : vector<1x5x128xf32> to vector<5x128xf32>
    %154 = arith.truncf %153 : vector<5x128xf32> to vector<5x128xbf16>
    %c1_176 = arith.constant 1 : index
    %c0_177 = arith.constant 0 : index
    %c0_178 = arith.constant 0 : index
    %155 = vector.load %arg3[%c1_176, %c0_177, %c0_178] : memref<5x128x256xbf16, #tpu.memory_space<vmem>>, vector<1x128x256xbf16>
    %156 = vector.shape_cast %155 : vector<1x128x256xbf16> to vector<128x256xbf16>
    %cst_179 = arith.constant dense<0.000000e+00> : vector<5x256xf32>
    %157 = tpu.matmul %154, %156, %cst_179 {dimension_numbers = #tpu.dot_dimension_numbers<[1], [0], [0], [1], [0, 0, 1, 1], [], []>} : vector<5x128xbf16>, vector<128x256xbf16>, vector<5x256xf32> -> vector<5x256xf32>
    %158 = arith.addf %151, %157 : vector<5x256xf32>
    %c0_180 = arith.constant 0 : index
    %c1_181 = arith.constant 1 : index
    %c0_182 = arith.constant 0 : index
    %159 = vector.load %arg13[%c0_180, %c1_181, %c0_182] : memref<2x7x128xf32, #tpu.memory_space<vmem>>, vector<1x5x128xf32>
    %160 = vector.shape_cast %159 : vector<1x5x128xf32> to vector<5x128xf32>
    %161 = arith.truncf %160 : vector<5x128xf32> to vector<5x128xbf16>
    %c2_183 = arith.constant 2 : index
    %c0_184 = arith.constant 0 : index
    %c0_185 = arith.constant 0 : index
    %162 = vector.load %arg3[%c2_183, %c0_184, %c0_185] : memref<5x128x256xbf16, #tpu.memory_space<vmem>>, vector<1x128x256xbf16>
    %163 = vector.shape_cast %162 : vector<1x128x256xbf16> to vector<128x256xbf16>
    %cst_186 = arith.constant dense<0.000000e+00> : vector<5x256xf32>
    %164 = tpu.matmul %161, %163, %cst_186 {dimension_numbers = #tpu.dot_dimension_numbers<[1], [0], [0], [1], [0, 0, 1, 1], [], []>} : vector<5x128xbf16>, vector<128x256xbf16>, vector<5x256xf32> -> vector<5x256xf32>
    %165 = arith.addf %158, %164 : vector<5x256xf32>
    %c1_187 = arith.constant 1 : index
    %c1_188 = arith.constant 1 : index
    %c0_189 = arith.constant 0 : index
    %166 = vector.load %arg13[%c1_187, %c1_188, %c0_189] : memref<2x7x128xf32, #tpu.memory_space<vmem>>, vector<1x5x128xf32>
    %167 = vector.shape_cast %166 : vector<1x5x128xf32> to vector<5x128xf32>
    %168 = arith.truncf %167 : vector<5x128xf32> to vector<5x128xbf16>
    %c3_190 = arith.constant 3 : index
    %c0_191 = arith.constant 0 : index
    %c0_192 = arith.constant 0 : index
    %169 = vector.load %arg3[%c3_190, %c0_191, %c0_192] : memref<5x128x256xbf16, #tpu.memory_space<vmem>>, vector<1x128x256xbf16>
    %170 = vector.shape_cast %169 : vector<1x128x256xbf16> to vector<128x256xbf16>
    %cst_193 = arith.constant dense<0.000000e+00> : vector<5x256xf32>
    %171 = tpu.matmul %168, %170, %cst_193 {dimension_numbers = #tpu.dot_dimension_numbers<[1], [0], [0], [1], [0, 0, 1, 1], [], []>} : vector<5x128xbf16>, vector<128x256xbf16>, vector<5x256xf32> -> vector<5x256xf32>
    %172 = arith.addf %165, %171 : vector<5x256xf32>
    %c0_194 = arith.constant 0 : index
    %c2_195 = arith.constant 2 : index
    %c0_196 = arith.constant 0 : index
    %173 = vector.load %arg13[%c0_194, %c2_195, %c0_196] : memref<2x7x128xf32, #tpu.memory_space<vmem>>, vector<1x5x128xf32>
    %174 = vector.shape_cast %173 : vector<1x5x128xf32> to vector<5x128xf32>
    %175 = arith.truncf %174 : vector<5x128xf32> to vector<5x128xbf16>
    %c4_197 = arith.constant 4 : index
    %c0_198 = arith.constant 0 : index
    %c0_199 = arith.constant 0 : index
    %176 = vector.load %arg3[%c4_197, %c0_198, %c0_199] : memref<5x128x256xbf16, #tpu.memory_space<vmem>>, vector<1x128x256xbf16>
    %177 = vector.shape_cast %176 : vector<1x128x256xbf16> to vector<128x256xbf16>
    %cst_200 = arith.constant dense<0.000000e+00> : vector<5x256xf32>
    %178 = tpu.matmul %175, %177, %cst_200 {dimension_numbers = #tpu.dot_dimension_numbers<[1], [0], [0], [1], [0, 0, 1, 1], [], []>} : vector<5x128xbf16>, vector<128x256xbf16>, vector<5x256xf32> -> vector<5x256xf32>
    %179 = arith.addf %172, %178 : vector<5x256xf32>
    %180 = vector.extract_strided_slice %179 {offsets = [0, 0], sizes = [5, 128], strides = [1, 1]} : vector<5x256xf32> to vector<5x128xf32>
    %181 = vector.extract_strided_slice %179 {offsets = [0, 128], sizes = [5, 128], strides = [1, 1]} : vector<5x256xf32> to vector<5x128xf32>
    %182 = arith.maximumf %180, %181 : vector<5x128xf32>
    %c1_201 = arith.constant 1 : index
    %c0_202 = arith.constant 0 : index
    %c0_203 = arith.constant 0 : index
    %183 = vector.load %arg13[%c1_201, %c0_202, %c0_203] : memref<2x7x128xf32, #tpu.memory_space<vmem>>, vector<1x5x128xf32>
    %184 = vector.shape_cast %183 : vector<1x5x128xf32> to vector<5x128xf32>
    %185 = arith.truncf %184 : vector<5x128xf32> to vector<5x128xbf16>
    %c0_204 = arith.constant 0 : index
    %c0_205 = arith.constant 0 : index
    %c0_206 = arith.constant 0 : index
    %186 = vector.load %arg3[%c0_204, %c0_205, %c0_206] : memref<5x128x256xbf16, #tpu.memory_space<vmem>>, vector<1x128x256xbf16>
    %187 = vector.shape_cast %186 : vector<1x128x256xbf16> to vector<128x256xbf16>
    %cst_207 = arith.constant dense<0.000000e+00> : vector<5x256xf32>
    %188 = tpu.matmul %185, %187, %cst_207 {dimension_numbers = #tpu.dot_dimension_numbers<[1], [0], [0], [1], [0, 0, 1, 1], [], []>} : vector<5x128xbf16>, vector<128x256xbf16>, vector<5x256xf32> -> vector<5x256xf32>
    %c0_208 = arith.constant 0 : index
    %c1_209 = arith.constant 1 : index
    %c0_210 = arith.constant 0 : index
    %189 = vector.load %arg13[%c0_208, %c1_209, %c0_210] : memref<2x7x128xf32, #tpu.memory_space<vmem>>, vector<1x5x128xf32>
    %190 = vector.shape_cast %189 : vector<1x5x128xf32> to vector<5x128xf32>
    %191 = arith.truncf %190 : vector<5x128xf32> to vector<5x128xbf16>
    %c1_211 = arith.constant 1 : index
    %c0_212 = arith.constant 0 : index
    %c0_213 = arith.constant 0 : index
    %192 = vector.load %arg3[%c1_211, %c0_212, %c0_213] : memref<5x128x256xbf16, #tpu.memory_space<vmem>>, vector<1x128x256xbf16>
    %193 = vector.shape_cast %192 : vector<1x128x256xbf16> to vector<128x256xbf16>
    %cst_214 = arith.constant dense<0.000000e+00> : vector<5x256xf32>
    %194 = tpu.matmul %191, %193, %cst_214 {dimension_numbers = #tpu.dot_dimension_numbers<[1], [0], [0], [1], [0, 0, 1, 1], [], []>} : vector<5x128xbf16>, vector<128x256xbf16>, vector<5x256xf32> -> vector<5x256xf32>
    %195 = arith.addf %188, %194 : vector<5x256xf32>
    %c1_215 = arith.constant 1 : index
    %c1_216 = arith.constant 1 : index
    %c0_217 = arith.constant 0 : index
    %196 = vector.load %arg13[%c1_215, %c1_216, %c0_217] : memref<2x7x128xf32, #tpu.memory_space<vmem>>, vector<1x5x128xf32>
    %197 = vector.shape_cast %196 : vector<1x5x128xf32> to vector<5x128xf32>
    %198 = arith.truncf %197 : vector<5x128xf32> to vector<5x128xbf16>
    %c2_218 = arith.constant 2 : index
    %c0_219 = arith.constant 0 : index
    %c0_220 = arith.constant 0 : index
    %199 = vector.load %arg3[%c2_218, %c0_219, %c0_220] : memref<5x128x256xbf16, #tpu.memory_space<vmem>>, vector<1x128x256xbf16>
    %200 = vector.shape_cast %199 : vector<1x128x256xbf16> to vector<128x256xbf16>
    %cst_221 = arith.constant dense<0.000000e+00> : vector<5x256xf32>
    %201 = tpu.matmul %198, %200, %cst_221 {dimension_numbers = #tpu.dot_dimension_numbers<[1], [0], [0], [1], [0, 0, 1, 1], [], []>} : vector<5x128xbf16>, vector<128x256xbf16>, vector<5x256xf32> -> vector<5x256xf32>
    %202 = arith.addf %195, %201 : vector<5x256xf32>
    %c0_222 = arith.constant 0 : index
    %c2_223 = arith.constant 2 : index
    %c0_224 = arith.constant 0 : index
    %203 = vector.load %arg13[%c0_222, %c2_223, %c0_224] : memref<2x7x128xf32, #tpu.memory_space<vmem>>, vector<1x5x128xf32>
    %204 = vector.shape_cast %203 : vector<1x5x128xf32> to vector<5x128xf32>
    %205 = arith.truncf %204 : vector<5x128xf32> to vector<5x128xbf16>
    %c3_225 = arith.constant 3 : index
    %c0_226 = arith.constant 0 : index
    %c0_227 = arith.constant 0 : index
    %206 = vector.load %arg3[%c3_225, %c0_226, %c0_227] : memref<5x128x256xbf16, #tpu.memory_space<vmem>>, vector<1x128x256xbf16>
    %207 = vector.shape_cast %206 : vector<1x128x256xbf16> to vector<128x256xbf16>
    %cst_228 = arith.constant dense<0.000000e+00> : vector<5x256xf32>
    %208 = tpu.matmul %205, %207, %cst_228 {dimension_numbers = #tpu.dot_dimension_numbers<[1], [0], [0], [1], [0, 0, 1, 1], [], []>} : vector<5x128xbf16>, vector<128x256xbf16>, vector<5x256xf32> -> vector<5x256xf32>
    %209 = arith.addf %202, %208 : vector<5x256xf32>
    %c1_229 = arith.constant 1 : index
    %c2_230 = arith.constant 2 : index
    %c0_231 = arith.constant 0 : index
    %210 = vector.load %arg13[%c1_229, %c2_230, %c0_231] : memref<2x7x128xf32, #tpu.memory_space<vmem>>, vector<1x5x128xf32>
    %211 = vector.shape_cast %210 : vector<1x5x128xf32> to vector<5x128xf32>
    %212 = arith.truncf %211 : vector<5x128xf32> to vector<5x128xbf16>
    %c4_232 = arith.constant 4 : index
    %c0_233 = arith.constant 0 : index
    %c0_234 = arith.constant 0 : index
    %213 = vector.load %arg3[%c4_232, %c0_233, %c0_234] : memref<5x128x256xbf16, #tpu.memory_space<vmem>>, vector<1x128x256xbf16>
    %214 = vector.shape_cast %213 : vector<1x128x256xbf16> to vector<128x256xbf16>
    %cst_235 = arith.constant dense<0.000000e+00> : vector<5x256xf32>
    %215 = tpu.matmul %212, %214, %cst_235 {dimension_numbers = #tpu.dot_dimension_numbers<[1], [0], [0], [1], [0, 0, 1, 1], [], []>} : vector<5x128xbf16>, vector<128x256xbf16>, vector<5x256xf32> -> vector<5x256xf32>
    %216 = arith.addf %209, %215 : vector<5x256xf32>
    %217 = vector.extract_strided_slice %216 {offsets = [0, 0], sizes = [5, 128], strides = [1, 1]} : vector<5x256xf32> to vector<5x128xf32>
    %218 = vector.extract_strided_slice %216 {offsets = [0, 128], sizes = [5, 128], strides = [1, 1]} : vector<5x256xf32> to vector<5x128xf32>
    %219 = arith.maximumf %217, %218 : vector<5x128xf32>
    %220 = arith.maximumf %182, %219 : vector<5x128xf32>
    %c0_236 = arith.constant 0 : index
    %c0_237 = arith.constant 0 : index
    %221 = vector.load %arg8[%c0_236, %c0_237] : memref<1x128xf32, #tpu.memory_space<vmem>>, vector<1x128xf32>
    %222 = vector.broadcast %221 : vector<1x128xf32> to vector<5x128xf32>
    %223 = arith.addf %220, %222 : vector<5x128xf32>
    %cst_238 = arith.constant 0.000000e+00 : f32
    %224 = vector.broadcast %cst_238 : f32 to vector<5x128xf32>
    %225 = arith.maximumf %223, %224 : vector<5x128xf32>
    %c0_239 = arith.constant 0 : index
    %c0_240 = arith.constant 0 : index
    %226 = vector.load %arg14[%c0_239, %c0_240] : memref<5x128xf32, #tpu.memory_space<vmem>>, vector<5x128xf32>
    tpu.vector_store %arg14[%c0_239, %c0_240], %225 {strides = array<i32>} : memref<5x128xf32, #tpu.memory_space<vmem>>, vector<5x128xf32>,
    %c0_241 = arith.constant 0 : index
    %c0_242 = arith.constant 0 : index
    %227 = vector.load %arg14[%c0_241, %c0_242] : memref<5x128xf32, #tpu.memory_space<vmem>>, vector<1x128xf32>
    %228 = arith.truncf %227 : vector<1x128xf32> to vector<1x128xbf16>
    %c0_243 = arith.constant 0 : index
    %c0_244 = arith.constant 0 : index
    %c0_245 = arith.constant 0 : index
    %229 = vector.load %arg4[%c0_243, %c0_244, %c0_245] : memref<5x128x128xbf16, #tpu.memory_space<vmem>>, vector<1x128x128xbf16>
    %230 = vector.shape_cast %229 : vector<1x128x128xbf16> to vector<128x128xbf16>
    %cst_246 = arith.constant dense<0.000000e+00> : vector<1x128xf32>
    %231 = tpu.matmul %228, %230, %cst_246 {dimension_numbers = #tpu.dot_dimension_numbers<[1], [0], [0], [1], [0, 0, 1, 1], [], []>} : vector<1x128xbf16>, vector<128x128xbf16>, vector<1x128xf32> -> vector<1x128xf32>
    %c1_247 = arith.constant 1 : index
    %c0_248 = arith.constant 0 : index
    %232 = vector.load %arg14[%c1_247, %c0_248] : memref<5x128xf32, #tpu.memory_space<vmem>>, vector<1x128xf32>
    %233 = arith.truncf %232 : vector<1x128xf32> to vector<1x128xbf16>
    %c1_249 = arith.constant 1 : index
    %c0_250 = arith.constant 0 : index
    %c0_251 = arith.constant 0 : index
    %234 = vector.load %arg4[%c1_249, %c0_250, %c0_251] : memref<5x128x128xbf16, #tpu.memory_space<vmem>>, vector<1x128x128xbf16>
    %235 = vector.shape_cast %234 : vector<1x128x128xbf16> to vector<128x128xbf16>
    %cst_252 = arith.constant dense<0.000000e+00> : vector<1x128xf32>
    %236 = tpu.matmul %233, %235, %cst_252 {dimension_numbers = #tpu.dot_dimension_numbers<[1], [0], [0], [1], [0, 0, 1, 1], [], []>} : vector<1x128xbf16>, vector<128x128xbf16>, vector<1x128xf32> -> vector<1x128xf32>
    %237 = arith.addf %231, %236 : vector<1x128xf32>
    %c2_253 = arith.constant 2 : index
    %c0_254 = arith.constant 0 : index
    %238 = vector.load %arg14[%c2_253, %c0_254] : memref<5x128xf32, #tpu.memory_space<vmem>>, vector<1x128xf32>
    %239 = arith.truncf %238 : vector<1x128xf32> to vector<1x128xbf16>
    %c2_255 = arith.constant 2 : index
    %c0_256 = arith.constant 0 : index
    %c0_257 = arith.constant 0 : index
    %240 = vector.load %arg4[%c2_255, %c0_256, %c0_257] : memref<5x128x128xbf16, #tpu.memory_space<vmem>>, vector<1x128x128xbf16>
    %241 = vector.shape_cast %240 : vector<1x128x128xbf16> to vector<128x128xbf16>
    %cst_258 = arith.constant dense<0.000000e+00> : vector<1x128xf32>
    %242 = tpu.matmul %239, %241, %cst_258 {dimension_numbers = #tpu.dot_dimension_numbers<[1], [0], [0], [1], [0, 0, 1, 1], [], []>} : vector<1x128xbf16>, vector<128x128xbf16>, vector<1x128xf32> -> vector<1x128xf32>
    %243 = arith.addf %237, %242 : vector<1x128xf32>
    %c3_259 = arith.constant 3 : index
    %c0_260 = arith.constant 0 : index
    %244 = vector.load %arg14[%c3_259, %c0_260] : memref<5x128xf32, #tpu.memory_space<vmem>>, vector<1x128xf32>
    %245 = arith.truncf %244 : vector<1x128xf32> to vector<1x128xbf16>
    %c3_261 = arith.constant 3 : index
    %c0_262 = arith.constant 0 : index
    %c0_263 = arith.constant 0 : index
    %246 = vector.load %arg4[%c3_261, %c0_262, %c0_263] : memref<5x128x128xbf16, #tpu.memory_space<vmem>>, vector<1x128x128xbf16>
    %247 = vector.shape_cast %246 : vector<1x128x128xbf16> to vector<128x128xbf16>
    %cst_264 = arith.constant dense<0.000000e+00> : vector<1x128xf32>
    %248 = tpu.matmul %245, %247, %cst_264 {dimension_numbers = #tpu.dot_dimension_numbers<[1], [0], [0], [1], [0, 0, 1, 1], [], []>} : vector<1x128xbf16>, vector<128x128xbf16>, vector<1x128xf32> -> vector<1x128xf32>
    %249 = arith.addf %243, %248 : vector<1x128xf32>
    %c4_265 = arith.constant 4 : index
    %c0_266 = arith.constant 0 : index
    %250 = vector.load %arg14[%c4_265, %c0_266] : memref<5x128xf32, #tpu.memory_space<vmem>>, vector<1x128xf32>
    %251 = arith.truncf %250 : vector<1x128xf32> to vector<1x128xbf16>
    %c4_267 = arith.constant 4 : index
    %c0_268 = arith.constant 0 : index
    %c0_269 = arith.constant 0 : index
    %252 = vector.load %arg4[%c4_267, %c0_268, %c0_269] : memref<5x128x128xbf16, #tpu.memory_space<vmem>>, vector<1x128x128xbf16>
    %253 = vector.shape_cast %252 : vector<1x128x128xbf16> to vector<128x128xbf16>
    %cst_270 = arith.constant dense<0.000000e+00> : vector<1x128xf32>
    %254 = tpu.matmul %251, %253, %cst_270 {dimension_numbers = #tpu.dot_dimension_numbers<[1], [0], [0], [1], [0, 0, 1, 1], [], []>} : vector<1x128xbf16>, vector<128x128xbf16>, vector<1x128xf32> -> vector<1x128xf32>
    %255 = arith.addf %249, %254 : vector<1x128xf32>
    %c0_271 = arith.constant 0 : index
    %c0_272 = arith.constant 0 : index
    %256 = vector.load %arg9[%c0_271, %c0_272] : memref<1x128xf32, #tpu.memory_space<vmem>>, vector<1x128xf32>
    %257 = arith.addf %255, %256 : vector<1x128xf32>
    %cst_273 = arith.constant 0.000000e+00 : f32
    %258 = vector.broadcast %cst_273 : f32 to vector<1x128xf32>
    %259 = arith.maximumf %257, %258 : vector<1x128xf32>
    %260 = arith.truncf %259 : vector<1x128xf32> to vector<1x128xbf16>
    %c0_274 = arith.constant 0 : index
    %c0_275 = arith.constant 0 : index
    %261 = vector.load %arg5[%c0_274, %c0_275] : memref<128x128xbf16, #tpu.memory_space<vmem>>, vector<128x128xbf16>
    %cst_276 = arith.constant dense<0.000000e+00> : vector<1x128xf32>
    %262 = tpu.matmul %260, %261, %cst_276 {dimension_numbers = #tpu.dot_dimension_numbers<[1], [0], [0], [1], [0, 0, 1, 1], [], []>} : vector<1x128xbf16>, vector<128x128xbf16>, vector<1x128xf32> -> vector<1x128xf32>
    %c0_277 = arith.constant 0 : index
    %c0_278 = arith.constant 0 : index
    %263 = vector.load %arg10[%c0_277, %c0_278] : memref<1x128xf32, #tpu.memory_space<vmem>>, vector<1x128xf32>
    %264 = arith.addf %262, %263 : vector<1x128xf32>
    %cst_279 = arith.constant 0.000000e+00 : f32
    %265 = vector.broadcast %cst_279 : f32 to vector<1x128xf32>
    %266 = arith.maximumf %264, %265 : vector<1x128xf32>
    %267 = arith.truncf %266 : vector<1x128xf32> to vector<1x128xbf16>
    %c0_280 = arith.constant 0 : index
    %c0_281 = arith.constant 0 : index
    %268 = vector.load %arg6[%c0_280, %c0_281] : memref<128x128xbf16, #tpu.memory_space<vmem>>, vector<128x128xbf16>
    %cst_282 = arith.constant dense<0.000000e+00> : vector<1x128xf32>
    %269 = tpu.matmul %267, %268, %cst_282 {dimension_numbers = #tpu.dot_dimension_numbers<[1], [0], [0], [1], [0, 0, 1, 1], [], []>} : vector<1x128xbf16>, vector<128x128xbf16>, vector<1x128xf32> -> vector<1x128xf32>
    %c0_283 = arith.constant 0 : index
    %c0_284 = arith.constant 0 : index
    %270 = vector.load %arg11[%c0_283, %c0_284] : memref<1x128xf32, #tpu.memory_space<vmem>>, vector<1x128xf32>
    %271 = arith.addf %269, %270 : vector<1x128xf32>
    %c0_285 = arith.constant 0 : index
    %c0_286 = arith.constant 0 : index
    %c0_287 = arith.constant 0 : index
    %272 = vector.load %arg12[%c0_285, %c0_286, %c0_287] : memref<1x1x128xf32, #tpu.memory_space<vmem>>, vector<1x1x128xf32>
    %273 = vector.shape_cast %272 : vector<1x1x128xf32> to vector<1x128xf32>
    %274 = vector.shape_cast %271 : vector<1x128xf32> to vector<1x1x128xf32>
    tpu.vector_store %arg12[%c0_285, %c0_286, %c0_287], %274 {strides = array<i32>} : memref<1x1x128xf32, #tpu.memory_space<vmem>>, vector<1x1x128xf32>,
    return
  }
  func.func @transform_0(%arg0: i32) -> (i32, i32, i32, i32) {
    %c0_i32 = arith.constant 0 : i32
    %c0_i32_0 = arith.constant 0 : i32
    %c0_i32_1 = arith.constant 0 : i32
    %c0_i32_2 = arith.constant 0 : i32
    return %arg0, %c0_i32, %c0_i32_0, %c0_i32_1 : i32, i32, i32, i32
  }
  func.func @transform_1(%arg0: i32) -> (i32, i32, i32) {
    %c0_i32 = arith.constant 0 : i32
    %c0_i32_0 = arith.constant 0 : i32
    %c0_i32_1 = arith.constant 0 : i32
    %c0_i32_2 = arith.constant 0 : i32
    return %c0_i32, %c0_i32_0, %c0_i32_1 : i32, i32, i32
  }
  func.func @transform_2(%arg0: i32) -> (i32, i32, i32) {
    %c0_i32 = arith.constant 0 : i32
    %c0_i32_0 = arith.constant 0 : i32
    %c0_i32_1 = arith.constant 0 : i32
    %c0_i32_2 = arith.constant 0 : i32
    return %c0_i32, %c0_i32_0, %c0_i32_1 : i32, i32, i32
  }
  func.func @transform_3(%arg0: i32) -> (i32, i32, i32) {
    %c0_i32 = arith.constant 0 : i32
    %c0_i32_0 = arith.constant 0 : i32
    %c0_i32_1 = arith.constant 0 : i32
    %c0_i32_2 = arith.constant 0 : i32
    return %c0_i32, %c0_i32_0, %c0_i32_1 : i32, i32, i32
  }
  func.func @transform_4(%arg0: i32) -> (i32, i32) {
    %c0_i32 = arith.constant 0 : i32
    %c0_i32_0 = arith.constant 0 : i32
    %c0_i32_1 = arith.constant 0 : i32
    return %c0_i32, %c0_i32_0 : i32, i32
  }
  func.func @transform_5(%arg0: i32) -> (i32, i32) {
    %c0_i32 = arith.constant 0 : i32
    %c0_i32_0 = arith.constant 0 : i32
    %c0_i32_1 = arith.constant 0 : i32
    return %c0_i32, %c0_i32_0 : i32, i32
  }
  func.func @transform_6(%arg0: i32) -> (i32, i32) {
    %c0_i32 = arith.constant 0 : i32
    %c0_i32_0 = arith.constant 0 : i32
    %c0_i32_1 = arith.constant 0 : i32
    return %c0_i32, %c0_i32_0 : i32, i32
  }
  func.func @transform_7(%arg0: i32) -> (i32, i32) {
    %c0_i32 = arith.constant 0 : i32
    %c0_i32_0 = arith.constant 0 : i32
    %c0_i32_1 = arith.constant 0 : i32
    return %c0_i32, %c0_i32_0 : i32, i32
  }
  func.func @transform_8(%arg0: i32) -> (i32, i32) {
    %c0_i32 = arith.constant 0 : i32
    %c0_i32_0 = arith.constant 0 : i32
    %c0_i32_1 = arith.constant 0 : i32
    return %c0_i32, %c0_i32_0 : i32, i32
  }
  func.func @transform_9(%arg0: i32) -> (i32, i32) {
    %c0_i32 = arith.constant 0 : i32
    %c0_i32_0 = arith.constant 0 : i32
    %c0_i32_1 = arith.constant 0 : i32
    return %c0_i32, %c0_i32_0 : i32, i32
  }
  func.func @transform_10(%arg0: i32) -> (i32, i32) {
    %c0_i32 = arith.constant 0 : i32
    %c0_i32_0 = arith.constant 0 : i32
    %c0_i32_1 = arith.constant 0 : i32
    return %c0_i32, %c0_i32_0 : i32, i32
  }
  func.func @transform_11(%arg0: i32) -> (i32, i32, i32) {
    %c0_i32 = arith.constant 0 : i32
    %c0_i32_0 = arith.constant 0 : i32
    %c0_i32_1 = arith.constant 0 : i32
    return %arg0, %c0_i32, %c0_i32_0 : i32, i32, i32
  }
}

</mosaic_0001>

<bundles_post_ra>
// kernel: net_forward.1
= control target key start
LH: loop header
LB: loop body
LE: loop exit
PB: predicated region body
PF: predicated region fallthrough
CT: control target
= control target key end

     0   :  { %s5167_s0 = inlined_call_operand.vmem [shape: bf16[2,4,8,32], index: 0, kind: input, shape index: {}]   ;;  %s5168_s1 = inlined_call_operand.vmem [shape: bf16[5,32,256], index: 1, kind: input, shape index: {}]   ;;  %s5169_s2 = inlined_call_operand.hbm [shape: bf16[5,128,256], index: 2, kind: input, shape index: {}]   ;;  %s5170_s3 = inlined_call_operand.hbm [shape: bf16[5,128,128], index: 3, kind: input, shape index: {}]   ;;  %s5171_s4 = inlined_call_operand.hbm [shape: bf16[128,128], index: 4, kind: input, shape index: {}]   ;;  %s5172_s5 = inlined_call_operand.hbm [shape: bf16[128,128], index: 5, kind: input, shape index: {}]   ;;  %s5173_s6 = inlined_call_operand.vmem [shape: f32[1,128], index: 6, kind: input, shape index: {}]   ;;  %s5174_s7 = inlined_call_operand.vmem [shape: f32[1,128], index: 7, kind: input, shape index: {}]   ;;  %s5175_s8 = inlined_call_operand.vmem [shape: f32[1,128], index: 8, kind: input, shape index: {}]   ;;  %s5176_s9 = inlined_call_operand.vmem [shape: f32[1,128], index: 9, kind: input, shape index: {}]   ;;  %s5177_s10 = inlined_call_operand.vmem [shape: f32[1,128], index: 10, kind: input, shape index: {}]   ;;  %s5178_s11 = inlined_call_operand.hbm [shape: f32[2,1,128], index: 11, kind: output, shape index: {}]  }
   0x1   :  { %5192 = sst [smem:[#allocation23_spill]] %s5170_s3 }
   0x2   :  { %16 = vsyncpa [#allocation5], 0 }
   0x3   :  { %17 = vsyncpa [#allocation8], 0 }
   0x4   :  { %18 = vsyncpa [#allocation11], 0 }
   0x5   :  { %19 = vsyncpa [#allocation6], 0 }
   0x6   :  { %21 = vsyncpa [#allocation6 + $0x1], 0  ;;  %s4578_s17 = smov 0   ;;  %s4580_s18 = smov 0  }
   0x7   :  { %s4582_s19 = smov 0   ;;  %s4584_s20 = smov 0  }
   0x8 LB: > { %5193 = sst [smem:[#allocation17_spill]] %s4492_s17  ;;  %s4599_s21 = sadd.s32 4294967295, %s4504_s20   ;;  %s4504_s20 = sphi %s4584_s20, %s5219_s20   ;;  %s4500_s19 = sphi %s4582_s19, %s5221_s19   ;;  %s4496_s18 = sphi %s4580_s18, %s5223_s18   ;;  %s4492_s17 = sphi %s4578_s17, %s5222_s17  }
   0x9   : > { %5194 = sst [smem:[#allocation18_spill]] %s4500_s19  ;;  %s3461_s22 = sadd.s32 4294967294, %s4504_s20  }
   0xa   : > { %5195 = sst [smem:[#allocation19_spill]] %s4504_s20  ;;  %s4603_s23 = sadd.s32 1, %s4504_s20  }
   0xb   : > { %5196 = sst [smem:[#allocation20_spill]] %s4603_s23  ;;  %s270_s24 = sadd.s32 1, %s4500_s19 }
   0xc   : > { %s267_s25 = ssub.s32 %s4504_s20, %s4603_s23  ;;  %p280_p0 = scmp.ne.s32.totalorder %s4500_s19, %s4496_s18 }
   0xd   : > { %p268_p1 = scmp.eq.s32.totalorder %s267_s25, 0  ;;  %p281_p2 = scmp.eq.s32.totalorder %s4599_s21, 1 }
   0xe   : > { %p286_p3 = scmp.ne.s32.totalorder %s4496_s18, %s4492_s17  ;;  %p287_p4 = scmp.eq.s32.totalorder %s3461_s22, 1 }
   0xf   : > { %s4614_s26 = scalar_select %p268_p1, %s4500_s19, %s270_s24  }
  0x10   : > { %p4616_p5 = por %p281_p2, %p280_p0  ;;  %p4620_p6 = por %p287_p4, %p286_p3 }
  0x11   : > { %5197 = sst [smem:[#allocation21_spill]] %s4614_s26  ;;  %p3462_p7 = scmp.ge.s32.totalorder %s4504_s20, 1 }
  0x12   : > { %s5198_s27 = scalar_select %p4616_p5, 1, 0 }
  0x13   : > { %s5199_s28 = scalar_select %p4620_p6, 1, 0 }
  0x14   : > { %p294_p8 = scmp.lt.s32.totalorder %s4504_s20, 3  ;;  %p5180_p9 = scmp.eq.s32.totalorder %s4599_s21, 0 }
  0x15   : > { %5200 = sst [smem:[#allocation22_spill]] %s5199_s28  ;;  %s4506_s30 = smov [#allocation7]  }
  0x16   : > { %p4627_p10 = pnand %p3462_p7, %p294_p8  ;;  %s322_s12 = sshll.u32 %s4506_s30, 4  ;;  %s323_s12 = int_to_ptr.vmem [resolvable:$true] %s322_s12 }
  0x17   : > { %s4507_s14 = smov [#allocation4]   ;;  %s5203_s3 = sld [smem:[#allocation23_spill]] }
  0x18   : > { %s5201_s29 = scalar_select %p4627_p10, 1, 0 }
  0x19   : > { %p4037_p11 = pneg %p4627_p10  ;;  %s309_s15 = sshll.u32 %s4507_s14, 4  ;;  %s4639_s15 = int_to_ptr.vmem [resolvable:$true] %s309_s15 }
  0x1b   : > { %p4635_p12 = pnand %p5180_p9, %p4037_p11 }
  0x1d   : > { %s4318_s24 = scalar_lea.hbm %s5203_s3, 5120  ;;  %p4649_p0 = pneg %p4635_p12 }
  0x1e   : > { %p4319_p13 = scmp.ne.s32.totalorder %s5203_s3, %s4318_s24  ;;  %p4325_p3 = scmp.lt.u32.totalorder %s4318_s24, %s5203_s3 }
  0x20   : > { %p4321_p1 = pnand %p4649_p0, %p4319_p13 }
  0x22   : > { %p4322_p2 = pneg %p4321_p1 }
  0x24   : > { %p4327_p4 = pnand %p4325_p3, %p4322_p2 }
  0x26   : > { %4330 = shalt.err (!%p4327_p4)
}
  0x27   : > { %s4331_s16 = scalar_lea.vmem %s323_s12, 5120  ;;  %p4339_p9 = scmp.lt.s32.totalorder %s323_s12, %s323_s12 }
  0x28   : > { %p4332_p7 = scmp.ne.s32.totalorder %s323_s12, %s4331_s16  ;;  %p4340_p6 = scmp.lt.s32.totalorder %s4331_s16, %s4331_s16 }
  0x2a   : > { %p4334_p8 = pnand %p4332_p7, %p4649_p0  ;;  %p4341_p5 = por %p4340_p6, %p4339_p9 }
  0x2c   : > { %p4335_p11 = pneg %p4334_p8 }
  0x2e   : > { %p4342_p10 = pnand %p4341_p5, %p4335_p11 }
  0x30   : > { %4345 = shalt.err (!%p4342_p10)
}
  0x31   : > { %s5188_s26 = smov 64   ;;  %s5190_s22 = smov 4  }
  0x32   : > { %4043 = dma.hbm_to_vmem [thread:$0]  (!%p4635_p12), %s5203_s3, 5120, %s323_s12, [#allocation8], %s5188_s26, %s5188_s26, %s5190_s22  }
  0x33   : > { %s4346_s23 = scalar_lea.hbm %s5169_s2, 10240 }
  0x34   : > { %p4347_p5 = scmp.ne.s32.totalorder %s5169_s2, %s4346_s23  ;;  %p4353_p10 = scmp.lt.u32.totalorder %s4346_s23, %s5169_s2 }
  0x36   : > { %p4349_p6 = pnand %p4347_p5, %p4649_p0 }
  0x38   : > { %p4350_p9 = pneg %p4349_p6 }
  0x3a   : > { %p4355_p13 = pnand %p4353_p10, %p4350_p9 }
  0x3c   : > { %4358 = shalt.err (!%p4355_p13)
}
  0x3d   : > { %s4359_s12 = scalar_lea.vmem %s4639_s15, 10240  ;;  %p4367_p4 = scmp.lt.s32.totalorder %s4639_s15, %s4639_s15 }
  0x3e   : > { %p4360_p1 = scmp.ne.s32.totalorder %s4639_s15, %s4359_s12  ;;  %p4368_p7 = scmp.lt.s32.totalorder %s4359_s12, %s4359_s12 }
  0x40   : > { %p4362_p2 = pnand %p4360_p1, %p4649_p0  ;;  %p4369_p8 = por %p4368_p7, %p4367_p4 }
  0x42   : > { %p4363_p3 = pneg %p4362_p2 }
  0x44   : > { %p4370_p11 = pnand %p4369_p8, %p4363_p3 }
  0x46   : > { %4373 = shalt.err (!%p4370_p11)
}
  0x47   : > { %s4510_s28 = smov 128   ;;  %s4511_s17 = smov 8  }
  0x48   : > { %4040 = dma.hbm_to_vmem [thread:$0]  (!%p4635_p12), %s5169_s2, 10240, %s4639_s15, [#allocation5], %s4510_s28, %s4510_s28, %s4511_s17  }
  0x49   : > { %s4512_s19 = smov [#allocation9]   ;;  %s4513_s25 = smov [#allocation10]  }
  0x4a   : > { %s335_s24 = sshll.u32 %s4512_s19, 4  ;;  %s348_s14 = sshll.u32 %s4513_s25, 4  ;;  %s336_s24 = int_to_ptr.vmem [resolvable:$true] %s335_s24  ;;  %s4691_s14 = int_to_ptr.vmem [resolvable:$true] %s348_s14 }
  0x4b   : > { %s4374_s26 = scalar_lea.hbm %s5171_s4, 1024 }
  0x4c   : > { %p4375_p5 = scmp.ne.s32.totalorder %s5171_s4, %s4374_s26  ;;  %p4381_p10 = scmp.lt.u32.totalorder %s4374_s26, %s5171_s4 }
  0x4e   : > { %p4377_p6 = pnand %p4375_p5, %p4649_p0 }
  0x50   : > { %p4378_p9 = pneg %p4377_p6 }
  0x52   : > { %p4383_p13 = pnand %p4381_p10, %p4378_p9 }
  0x54   : > { %4386 = shalt.err (!%p4383_p13)
}
  0x55   : > { %s4387_s28 = scalar_lea.vmem %s336_s24, 1024  ;;  %p4395_p4 = scmp.lt.s32.totalorder %s336_s24, %s336_s24 }
  0x56   : > { %p4388_p1 = scmp.ne.s32.totalorder %s336_s24, %s4387_s28  ;;  %p4396_p7 = scmp.lt.s32.totalorder %s4387_s28, %s4387_s28 }
  0x58   : > { %p4390_p2 = pnand %p4388_p1, %p4649_p0  ;;  %p4397_p8 = por %p4396_p7, %p4395_p4 }
  0x5a   : > { %p4391_p3 = pneg %p4390_p2 }
  0x5c   : > { %p4398_p11 = pnand %p4397_p8, %p4391_p3 }
  0x5e   : > { %4401 = shalt.err (!%p4398_p11)
}
  0x5f   : > { %s5205_s3 = smov 4   ;;  %s5206_s22 = smov 64  }
  0x60   : > { %4046 = dma.hbm_to_vmem [thread:$0]  (!%p4635_p12), %s5171_s4, 1024, %s336_s24, [#allocation8], %s5206_s22, %s5206_s22, %s5205_s3  }
  0x61   : > { %s4402_s25 = scalar_lea.hbm %s5172_s5, 1024 }
  0x62   : > { %p4403_p5 = scmp.ne.s32.totalorder %s5172_s5, %s4402_s25  ;;  %p4409_p10 = scmp.lt.u32.totalorder %s4402_s25, %s5172_s5 }
  0x64   : > { %p4405_p6 = pnand %p4403_p5, %p4649_p0 }
  0x66   : > { %p4406_p9 = pneg %p4405_p6 }
  0x68   : > { %p4411_p13 = pnand %p4409_p10, %p4406_p9 }
  0x6a   : > { %4414 = shalt.err (!%p4411_p13)
}
  0x6b   : > { %s4415_s24 = scalar_lea.vmem %s4691_s14, 1024  ;;  %p4423_p4 = scmp.lt.s32.totalorder %s4691_s14, %s4691_s14 }
  0x6c   : > { %p4416_p1 = scmp.ne.s32.totalorder %s4691_s14, %s4415_s24  ;;  %p4424_p7 = scmp.lt.s32.totalorder %s4415_s24, %s4415_s24 }
  0x6e   : > { %p4418_p2 = pnand %p4416_p1, %p4649_p0  ;;  %p4425_p8 = por %p4424_p7, %p4423_p4 }
  0x70   : > { %p4419_p3 = pneg %p4418_p2 }
  0x72   : > { %p4426_p11 = pnand %p4425_p8, %p4419_p3 }
  0x74   : > { %4429 = shalt.err (!%p4426_p11)
}
  0x75   : > { %4049 = dma.hbm_to_vmem [thread:$0]  (!%p4635_p12), %s5172_s5, 1024, %s4691_s14, [#allocation11], %s5206_s22, %s5206_s22, %s5205_s3  }
  0x76   : > { %p5207_p5 = scmp.ne.s32.totalorder %s5201_s29, 0 }
  0x77   : > { %p5208_p0 = scmp.eq.s32.totalorder (!%p5207_p5), %s4599_s21, 0 }
  0x78   : > { %387 = sbr.rel (%p5207_p5) target bundleno = 1588 (0x634), region = 64 }
  0x7f   : > { %4475 = dma.done.wait (%p5208_p0), [#allocation5], 10240   ;;  %p5209_p6 = pmov %p5208_p0 }
  0x80   : > { %p5210_p9 = pmov %p5208_p0 }
  0x81   : > { %4477 = vsyncadd (%p5209_p6), [#allocation5], 4294957056 }
  0x82   : > { %4479 = dma.done.wait (%p5210_p9), [#allocation8], 6144   ;;  %p5211_p10 = pmov %p5208_p0 }
  0x83   : > { %p5212_p13 = pmov %p5208_p0 }
  0x84   : > { %4481 = vsyncadd (%p5211_p10), [#allocation8], 4294961152 }
  0x85   : > { %4483 = dma.done.wait (%p5212_p13), [#allocation11], 1024   ;;  %p5213_p12 = pmov %p5208_p0 }
  0x86   : > { %p438_p1 = scmp.lt.s32.totalorder %s4599_s21, 1  ;;  %v4514_v0 = vmov 0   ;;  %v4761_v1 = vld [vmem:[%s5168_s1 + $0x24] ss:$8 sps:$4 sm:$0xff]   ;;  %v4772_v3 = vld [vmem:[%s5168_s1 + $0x20] ss:$8 sps:$4 sm:$0xff]  }
  0x87   : > { %4485 = vsyncadd (%p5213_p12), [#allocation11], 4294966272  ;;  %512 = vmatprep.mubr.bf16.mxu1 %v4514_v0  ;;  %647 = vmatprep.mubr.bf16.mxu0 %v4514_v0  ;;  %v4766_v2 = vld [vmem:[%s5168_s1 + $0x44] ss:$8 sps:$4 sm:$0xff]   ;;  %v4777_v4 = vld [vmem:[%s5168_s1 + $0x40] ss:$8 sps:$4 sm:$0xff]  }
  0x88   : > { %s439_s29 = scalar_select %p438_p1, %s4599_s21, 1  ;;  %480 = vmatprep.subr.bf16.mxu1 %v4761_v1  ;;  %615 = vmatprep.subr.bf16.mxu0 %v4766_v2  ;;  %v4783_v5 = vld [vmem:[%s5168_s1 + $0x34] ss:$8 sps:$4 sm:$0xff]   ;;  %v4800_v7 = vld [vmem:[%s5168_s1 + $0x30] ss:$8 sps:$4 sm:$0xff]   ;;  %vm476_vm0 = vcmask 261120  }
  0x89   : > { %481 = vmatpush1.bf16.msra.mxu1 %v4772_v3  ;;  %616 = vmatpush1.bf16.msra.mxu0 %v4777_v4  ;;  %v4795_v6 = vld [vmem:[%s5168_s1 + $0x54] ss:$8 sps:$4 sm:$0xff]   ;;  %v4806_v8 = vld [vmem:[%s5168_s1 + $0x50] ss:$8 sps:$4 sm:$0xff]   ;;  %v4815_v10 = vld [vmem:[%s5168_s1 + $0x4] ss:$8 sps:$4 sm:$0xff]  }
  0x8a   : > { %s3721_s14 = sshll.u32 %s439_s29, 4  ;;  %482 = vmatprep.subr.bf16.mxu1 %v4783_v5  ;;  %617 = vmatprep.subr.bf16.mxu0 %v4795_v6  ;;  %v4820_v11 = vld [vmem:[%s5168_s1] ss:$8 sps:$4 sm:$0xff]   ;;  %v4833_v14 = vld [vmem:[%s5168_s1 + $0x64] ss:$8 sps:$4 sm:$0xff]   ;;  %vm4516_vm1 = vmmov 0  }
  0x8b   : > { %s4788_s24 = scalar_lea.vmem %s5167_s0, %s3721_s14  ;;  %v4828_v13 = vld [vmem:[%s5168_s1 + $0x60] ss:$8 sps:$4 sm:$0xff]   ;;  %v4840_v15 = vld [vmem:[%s5168_s1 + $0x14] ss:$8 sps:$4 sm:$0xff]   ;;  %v4848_v16 = vld [vmem:[%s5168_s1 + $0x10] ss:$8 sps:$4 sm:$0xff]  }
  0x8c   : > { %v4810_v9 = vld [vmem:[%s4788_s24 + $0x4] sm:$0xf]  ;;  %v3490_v12 = vld [vmem:[%s4788_s24 + $0x8] sm:$0xf]  ;;  %v4853_v17 = vld [vmem:[%s5168_s1 + $0x74] ss:$8 sps:$4 sm:$0xff]  }
  0x8d   : > { %483 = vmatpush1.bf16.msra.mxu1 %v4800_v7  ;;  %618 = vmatpush1.bf16.msra.mxu0 %v4806_v8  ;;  %v4860_v18 = vld [vmem:[%s5168_s1 + $0x70] ss:$8 sps:$4 sm:$0xff]   ;;  %v4867_v19 = vld [vmem:[%s5168_s1 + $0x84] ss:$8 sps:$4 sm:$0xff]   ;;  %v444_v20 = vld [vmem:[%s4788_s24] sm:$0xf]  ;;  %v3524_v32 = vcombine.low %v4810_v9, %v4810_v9 }
  0x8e   : > { %544 = vmatprep.subr.bf16.mxu1 %v4815_v10  ;;  %688 = vmatprep.subr.bf16.mxu0 %v4833_v14  ;;  %v3500_v21 = vld [vmem:[%s4788_s24 + $0xc] sm:$0xf]  ;;  %v3514_v22 = vcombine.low %v444_v20, %v444_v20  ;;  %v4880_v23 = vld [vmem:[%s5168_s1 + $0x80] ss:$8 sps:$4 sm:$0xff]   ;;  %v4885_v24 = vld [vmem:[%s5168_s1 + $0x94] ss:$8 sps:$4 sm:$0xff]  }
  0x8f   : > { %v4890_v25 = vld [vmem:[%s5168_s1 + $0x90] ss:$8 sps:$4 sm:$0xff]   ;;  %v4140_v30 = vld [vmem:[%s4788_s24] ss:$0 sps:$4 sm:$0xff]   ;;  %v4141_v31 = vld [vmem:[%s4788_s24 + $0x4] ss:$0 sps:$4 sm:$0xff]  }
  0x90   : > { %3484 = vmatmul.mubr.msk.bf16.vlgmr.msra.gmra.mrb[0].mxu1 %vm476_vm0, %v4810_v9  ;;  %3499 = vmatmul.mubr.msk.bf16.vlgmr.msra.gmra.mrb[0].mxu0 %vm476_vm0, %v3490_v12  ;;  %v742_v26 = vshll.u32 %v3514_v22, 16  ;;  %v740_v27 = vshrl.u32 %v3514_v22, 16  ;;  %v3527_v33 = vld [vmem:[%s4788_s24 + $0x8] sm:$0xf]  ;;  %v987_v34 = vshll.u32 %v3524_v32, 16  ;;  %v1198_v37 = vshll.u32 %v4140_v30, 16 }
  0x91   : > { %545 = vmatpush1.bf16.msra.mxu1 %v4820_v11  ;;  %689 = vmatpush1.bf16.msra.mxu0 %v4828_v13  ;;  %v4920_v35 = vld [vmem:[%s4788_s24 + $0xc] sm:$0xf]  ;;  %v4922_v36 = vcombine.low %v3527_v33, %v3527_v33  ;;  %v1279_v38 = vshll.u32 %v4141_v31, 16  ;;  %v985_v39 = vshrl.u32 %v3524_v32, 16  ;;  %v1196_v42 = vshrl.u32 %v4140_v30, 16  ;;  %s436_s14 = sand.u32 1, %s4496_s18  }
  0x92   : > { %546 = vmatprep.subr.bf16.mxu1 %v4840_v15  ;;  %690 = vmatprep.subr.bf16.mxu0 %v4853_v17  ;;  %v744_v28 = vrot.slane %v742_v26, 1  ;;  %v989_v40 = vrot.slane %v987_v34, 1  ;;  %v1200_v43 = vrot.slane %v1198_v37, 1  ;;  %v1277_v44 = vshrl.u32 %v4141_v31, 16  ;;  %v4144_v54 = vld [vmem:[#allocation4 + $0x84] ss:$8 sps:$4 sm:$0xff]  }
  0x93   : > { %576 = vmatprep.mubr.bf16.mxu1 %v4514_v0  ;;  %720 = vmatprep.mubr.bf16.mxu0 %v4514_v0  ;;  %v1359_v41 = vshll.u32 %v4922_v36, 16  ;;  %v1281_v45 = vrot.slane %v1279_v38, 1  ;;  %v1357_v49 = vshrl.u32 %v4922_v36, 16  ;;  %v3578_v52 = vcombine.low %v4920_v35, %v4920_v35  ;;  %v4142_v55 = vld [vmem:[#allocation4 + $0x80] ss:$8 sps:$4 sm:$0xff]   ;;  %s3718_s26 = sshll.u32 %s4599_s21, 4 }
  0x94   : > { %v745_v29 = vor.u32 %v744_v28, %v740_v27  ;;  %v1201_v46 = vor.u32 %v1200_v43, %v1196_v42  ;;  %v990_v47 = vor.u32 %v989_v40, %v985_v39  ;;  %v4147_v56 = vld [vmem:[#allocation4 + $0x94] ss:$8 sps:$4 sm:$0xff]   ;;  %v4145_v59 = vld [vmem:[#allocation4 + $0x90] ss:$8 sps:$4 sm:$0xff]   ;;  %v4150_v60 = vld [vmem:[#allocation4 + $0xa4] ss:$8 sps:$4 sm:$0xff]   ;;  %s5125_s12 = scalar_lea.hbm %s5178_s11, %s3718_s26 }
  0x95   : > { %547 = vmatpush1.bf16.msra.mxu1 %v4848_v16  ;;  %691 = vmatpush1.bf16.msra.mxu0 %v4860_v18  ;;  %v1282_v48 = vor.u32 %v1281_v45, %v1277_v44  ;;  %v1361_v50 = vrot.slane %v1359_v41, 1  ;;  %v1604_v53 = vshll.u32 %v3578_v52, 16  ;;  %v1602_v57 = vshrl.u32 %v3578_v52, 16  ;;  %v4148_v62 = vld [vmem:[#allocation4 + $0xa0] ss:$8 sps:$4 sm:$0xff]   ;;  %s437_s23 = scalar_lea.vmem [#allocation12], %s436_s14 }
  0x96   : > { %813 = vmatprep.subr.bf16.mxu1 %v4761_v1  ;;  %769 = vmatprep.subr.bf16.mxu0 %v4867_v19  ;;  %v4153_v63 = vld [vmem:[#allocation4 + $0xb4] ss:$8 sps:$4 sm:$0xff]   ;;  %v3526_v26 = vld [vmem:[%s5173_s6] ss:$0 sm:$0xff]  ;;  %v4169_v40 = vld [vmem:[#allocation4 + $0x10] ss:$8 sps:$4 sm:$0xff]  }
  0x97   : > { %v1362_v51 = vor.u32 %v1361_v50, %v1357_v49  ;;  %v1606_v58 = vrot.slane %v1604_v53, 1  ;;  %v4166_v37 = vld [vmem:[#allocation4] ss:$8 sps:$4 sm:$0xff]   ;;  %v4171_v39 = vld [vmem:[#allocation4 + $0x14] ss:$8 sps:$4 sm:$0xff]   ;;  %s3365_s19 = sshll.u32 %s437_s23, 4  ;;  %s5127_s19 = int_to_ptr.vmem [resolvable:$true] %s3365_s19 }
  0x98   : > { %v4174_v41 = vld [vmem:[#allocation4 + $0x24] ss:$8 sps:$4 sm:$0xff]   ;;  %v4172_v42 = vld [vmem:[#allocation4 + $0x20] ss:$8 sps:$4 sm:$0xff]   ;;  %v4177_v43 = vld [vmem:[#allocation4 + $0x34] ss:$8 sps:$4 sm:$0xff]  }
  0x99   : > { %v1607_v61 = vor.u32 %v1606_v58, %v1602_v57  ;;  %v4175_v44 = vld [vmem:[#allocation4 + $0x30] ss:$8 sps:$4 sm:$0xff]   ;;  %v4180_v45 = vld [vmem:[#allocation4 + $0x44] ss:$8 sps:$4 sm:$0xff]   ;;  %v4184_v50 = vld [vmem:[#allocation4 + $0x60] ss:$8 sps:$4 sm:$0xff]  }
  0x9a   : > { %v4186_v49 = vld [vmem:[#allocation4 + $0x64] ss:$8 sps:$4 sm:$0xff]   ;;  %v5014_v52 = vld [vmem:[#allocation4 + $0x70] ss:$8 sps:$4 sm:$0xff]   ;;  %s3353_s24 = scalar_lea.sflag [#allocation6], %s436_s14  ;;  %s4430_s21 = scalar_lea.vmem %s5127_s19, 16 }
  0x9b   : > { %v5016_v53 = vld [vmem:[#allocation4 + $0x104] ss:$8 sps:$4 sm:$0xff]   ;;  %p4431_p2 = scmp.ne.s32.totalorder %s5127_s19, %s4430_s21  ;;  %p5214_p3 = scmp.ne.s32.totalorder %s5198_s27, 0 }
  0x9c   : > { %3489 = vmatmul.mubr.msk.bf16.vlgmr.msra.gmra.mrb[0].mxu1 %vm476_vm0, %v444_v20  ;;  %3509 = vmatmul.mubr.msk.bf16.vlgmr.msra.gmra.mrb[0].mxu0 %vm476_vm0, %v3500_v21  ;;  %s4517_s20 = smov [#allocation12]  }
  0x9d   : > { %814 = vmatpush1.bf16.msra.mxu1 %v4772_v3  ;;  %770 = vmatpush1.bf16.msra.mxu0 %v4880_v23  ;;  %p4432_p4 = pnand %p4431_p2, %p5214_p3  ;;  %s4434_s15 = sshll.u32 %s4517_s20, 4  ;;  %s4435_s15 = int_to_ptr.vmem [resolvable:$false] %s4434_s15 }
  0x9e   : > { %815 = vmatprep.subr.bf16.mxu1 %v4783_v5  ;;  %845 = vmatprep.mubr.bf16.mxu1 %v4514_v0  ;;  %s4436_s28 = scalar_lea.vmem %s4435_s15, 32  ;;  %p4437_p8 = scmp.lt.s32.totalorder %s5127_s19, %s4435_s15 }
  0x9f   : > { %771 = vmatprep.subr.bf16.mxu0 %v4885_v24  ;;  %801 = vmatprep.mubr.bf16.mxu0 %v4514_v0  ;;  %p4433_p7 = pneg %p4432_p4  ;;  %p4438_p11 = scmp.lt.s32.totalorder %s4436_s28, %s4430_s21 }
  0xa1   : > { %816 = vmatpush1.bf16.msra.mxu1 %v4800_v7  ;;  %772 = vmatpush1.bf16.msra.mxu0 %v4890_v25  ;;  %p4439_p5 = por %p4438_p11, %p4437_p8 }
  0xa2   : > { %854 = vmatprep.subr.bf16.mxu1 %v4815_v10  ;;  %1082 = vmatprep.subr.bf16.mxu0 %v4761_v1 }
  0xa3   : > { %p4440_p0 = pnand %p4439_p5, %p4433_p7 }
  0xa4   : > { %3520 = vmatmul.mubr.msk.bf16.vlgmr.msra.gmra.mrb[4].mxu1 %vm476_vm0, %v3490_v12 }
  0xa5   : > { %855 = vmatpush1.bf16.msra.mxu1 %v4820_v11  ;;  %886 = vmatprep.mubr.bf16.mxu1 %v4514_v0 }
  0xa6   : > { %856 = vmatprep.subr.bf16.mxu1 %v4840_v15 }
  0xa8   : > { %3519 = vmatmul.mubr.msk.bf16.vlgmr.msra.gmra.mrb[0].mxu0 %vm476_vm0, %v745_v29 }
  0xa9   : > { %1083 = vmatpush1.bf16.msra.mxu0 %v4772_v3  ;;  %857 = vmatpush1.bf16.msra.mxu1 %v4848_v16 }
  0xaa   : > { %1084 = vmatprep.subr.bf16.mxu0 %v4783_v5  ;;  %1114 = vmatprep.mubr.bf16.mxu0 %v4514_v0 }
  0xab   : > { %895 = vmatprep.subr.bf16.mxu1 %v4766_v2 }
  0xad   : > { %1085 = vmatpush1.bf16.msra.mxu0 %v4800_v7 }
  0xae   : > { %1146 = vmatprep.subr.bf16.mxu0 %v4815_v10 }
  0xb0   : > { %3521 = vmatmul.mubr.msk.bf16.vlgmr.msra.gmra.mrb[4].mxu1 %vm476_vm0, %v4810_v9  ;;  %3537 = vmatmul.mubr.msk.bf16.vlgmr.msra.gmra.mrb[4].mxu0 %vm476_vm0, %v4920_v35  ;;  %v4163_v9 = vld [vmem:[#allocation4 + $0xf0] ss:$8 sps:$4 sm:$0xff]  }
  0xb1   : > { %896 = vmatpush1.bf16.msra.mxu1 %v4777_v4  ;;  %1147 = vmatpush1.bf16.msra.mxu0 %v4820_v11 }
  0xb2   : > { %897 = vmatprep.subr.bf16.mxu1 %v4795_v6  ;;  %1148 = vmatprep.subr.bf16.mxu0 %v4840_v15 }
  0xb3   : > { %927 = vmatprep.mubr.bf16.mxu1 %v4514_v0  ;;  %1178 = vmatprep.mubr.bf16.mxu0 %v4514_v0 }
  0xb5   : > { %898 = vmatpush1.bf16.msra.mxu1 %v4806_v8  ;;  %1149 = vmatpush1.bf16.msra.mxu0 %v4848_v16 }
  0xb6   : > { %938 = vmatprep.subr.bf16.mxu1 %v4833_v14  ;;  %1225 = vmatprep.subr.bf16.mxu0 %v4766_v2 }
  0xbc   : > { %3522 = vmatmul.mubr.msk.bf16.vlgmr.msra.gmra.mrb[4].mxu1 %vm476_vm0, %v3500_v21  ;;  %3542 = vmatmul.mubr.msk.bf16.vlgmr.msra.gmra.mrb[4].mxu0 %vm476_vm0, %v3527_v33 }
  0xbd   : > { %939 = vmatpush1.bf16.msra.mxu1 %v4828_v13  ;;  %1226 = vmatpush1.bf16.msra.mxu0 %v4777_v4 }
  0xbe   : > { %940 = vmatprep.subr.bf16.mxu1 %v4853_v17  ;;  %1227 = vmatprep.subr.bf16.mxu0 %v4795_v6 }
  0xbf   : > { %970 = vmatprep.mubr.bf16.mxu1 %v4514_v0  ;;  %1257 = vmatprep.mubr.bf16.mxu0 %v4514_v0 }
  0xc1   : > { %941 = vmatpush1.bf16.msra.mxu1 %v4860_v18  ;;  %1228 = vmatpush1.bf16.msra.mxu0 %v4806_v8 }
  0xc2   : > { %994 = vmatprep.subr.bf16.mxu1 %v4867_v19  ;;  %1306 = vmatprep.subr.bf16.mxu0 %v4833_v14 }
  0xc8   : > { %3523 = vmatmul.mubr.msk.bf16.vlgmr.msra.gmra.mrb[4].mxu1 %vm476_vm0, %v745_v29  ;;  %3552 = vmatmul.mubr.msk.bf16.vlgmr.msra.gmra.mrb[4].mxu0 %vm476_vm0, %v1201_v46 }
  0xc9   : > { %995 = vmatpush1.bf16.msra.mxu1 %v4880_v23  ;;  %1307 = vmatpush1.bf16.msra.mxu0 %v4828_v13 }
  0xca   : > { %996 = vmatprep.subr.bf16.mxu1 %v4885_v24  ;;  %1308 = vmatprep.subr.bf16.mxu0 %v4853_v17 }
  0xcb   : > { %1026 = vmatprep.mubr.bf16.mxu1 %v4514_v0  ;;  %1338 = vmatprep.mubr.bf16.mxu0 %v4514_v0 }
  0xcd   : > { %997 = vmatpush1.bf16.msra.mxu1 %v4890_v25  ;;  %1309 = vmatpush1.bf16.msra.mxu0 %v4860_v18 }
  0xce   : > { %1430 = vmatprep.subr.bf16.mxu1 %v4761_v1  ;;  %1386 = vmatprep.subr.bf16.mxu0 %v4867_v19  ;;  %v4151_v1 = vld [vmem:[#allocation4 + $0xb0] ss:$8 sps:$4 sm:$0xff]  }
  0xd4   : > { %3525 = vmatmul.mubr.msk.bf16.vlgmr.msra.gmra.mrb[4].mxu1 %vm476_vm0, %v990_v47  ;;  %3563 = vmatmul.mubr.msk.bf16.vlgmr.msra.gmra.mrb[4].mxu0 %vm476_vm0, %v1282_v48  ;;  %v4183_v47 = vld [vmem:[#allocation4 + $0x54] ss:$8 sps:$4 sm:$0xff]  }
  0xd5   : > { %1431 = vmatpush1.bf16.msra.mxu1 %v4772_v3  ;;  %1387 = vmatpush1.bf16.msra.mxu0 %v4880_v23  ;;  %v4154_v3 = vld [vmem:[#allocation4 + $0xc0] ss:$8 sps:$4 sm:$0xff]  }
  0xd6   : > { %1432 = vmatprep.subr.bf16.mxu1 %v4783_v5  ;;  %1462 = vmatprep.mubr.bf16.mxu1 %v4514_v0  ;;  %v4157_v5 = vld [vmem:[#allocation4 + $0xd0] ss:$8 sps:$4 sm:$0xff]  }
  0xd7   : > { %1388 = vmatprep.subr.bf16.mxu0 %v4885_v24  ;;  %1418 = vmatprep.mubr.bf16.mxu0 %v4514_v0 }
  0xd9   : > { %1433 = vmatpush1.bf16.msra.mxu1 %v4800_v7  ;;  %1389 = vmatpush1.bf16.msra.mxu0 %v4890_v25  ;;  %v4160_v7 = vld [vmem:[#allocation4 + $0xe0] ss:$8 sps:$4 sm:$0xff]  }
  0xda   : > { %1471 = vmatprep.subr.bf16.mxu1 %v4815_v10  ;;  %1784 = vmatprep.subr.bf16.mxu0 %v4144_v54  ;;  %v4168_v10 = vld [vmem:[#allocation4 + $0x4] ss:$8 sps:$4 sm:$0xff]  }
  0xdc   : > { %3574 = vmatmul.mubr.msk.bf16.vlgmr.msra.gmra.mrb[8].mxu1 %vm476_vm0, %v1201_v46  ;;  %v4178_v46 = vld [vmem:[#allocation4 + $0x40] ss:$8 sps:$4 sm:$0xff]  }
  0xdd   : > { %1472 = vmatpush1.bf16.msra.mxu1 %v4820_v11  ;;  %1503 = vmatprep.mubr.bf16.mxu1 %v4514_v0 }
  0xde   : > { %1473 = vmatprep.subr.bf16.mxu1 %v4840_v15 }
  0xe0   : > { %3573 = vmatmul.mubr.msk.bf16.vlgmr.msra.gmra.mrb[4].mxu0 %vm476_vm0, %v1362_v51 }
  0xe1   : > { %1474 = vmatpush1.bf16.msra.mxu1 %v4848_v16  ;;  %1816 = vmatprep.mubr.bf16.mxu0 %v4514_v0 }
  0xe2   : > { %1512 = vmatprep.subr.bf16.mxu1 %v4766_v2  ;;  %1785 = vmatpush1.bf16.msra.mxu0 %v4142_v55  ;;  %v4156_v2 = vld [vmem:[#allocation4 + $0xc4] ss:$8 sps:$4 sm:$0xff]  }
  0xe3   : > { %1786 = vmatprep.subr.bf16.mxu0 %v4147_v56 }
  0xe6   : > { %1787 = vmatpush1.bf16.msra.mxu0 %v4145_v59 }
  0xe7   : > { %1788 = vmatprep.subr.bf16.mxu0 %v4150_v60 }
  0xe8   : > { %3575 = vmatmul.mubr.msk.bf16.vlgmr.msra.gmra.mrb[8].mxu1 %vm476_vm0, %v4920_v35 }
  0xe9   : > { %1513 = vmatpush1.bf16.msra.mxu1 %v4777_v4  ;;  %1544 = vmatprep.mubr.bf16.mxu1 %v4514_v0  ;;  %v4159_v4 = vld [vmem:[#allocation4 + $0xd4] ss:$8 sps:$4 sm:$0xff]  }
  0xea   : > { %1514 = vmatprep.subr.bf16.mxu1 %v4795_v6  ;;  %1789 = vmatpush1.bf16.msra.mxu0 %v4148_v62  ;;  %v4162_v6 = vld [vmem:[#allocation4 + $0xe4] ss:$8 sps:$4 sm:$0xff]  }
  0xeb   : > { %1790 = vmatprep.subr.bf16.mxu0 %v4153_v63 }
  0xed   : > { %1515 = vmatpush1.bf16.msra.mxu1 %v4806_v8  ;;  %v4165_v8 = vld [vmem:[#allocation4 + $0xf4] ss:$8 sps:$4 sm:$0xff]  }
  0xee   : > { %1555 = vmatprep.subr.bf16.mxu1 %v4833_v14  ;;  %1791 = vmatpush1.bf16.msra.mxu0 %v4151_v1 }
  0xef   : > { %1792 = vmatprep.subr.bf16.mxu0 %v4156_v2 }
  0xf2   : > { %1793 = vmatpush1.bf16.msra.mxu0 %v4154_v3 }
  0xf3   : > { %1794 = vmatprep.subr.bf16.mxu0 %v4159_v4 }
  0xf4   : > { %3576 = vmatmul.mubr.msk.bf16.vlgmr.msra.gmra.mrb[8].mxu1 %vm476_vm0, %v1282_v48  ;;  %v4181_v48 = vld [vmem:[#allocation4 + $0x50] ss:$8 sps:$4 sm:$0xff]  }
  0xf5   : > { %1556 = vmatpush1.bf16.msra.mxu1 %v4828_v13  ;;  %1587 = vmatprep.mubr.bf16.mxu1 %v4514_v0 }
  0xf6   : > { %1557 = vmatprep.subr.bf16.mxu1 %v4853_v17  ;;  %1795 = vmatpush1.bf16.msra.mxu0 %v4157_v5 }
  0xf7   : > { %1796 = vmatprep.subr.bf16.mxu0 %v4162_v6 }
  0xf9   : > { %1558 = vmatpush1.bf16.msra.mxu1 %v4860_v18 }
  0xfa   : > { %1611 = vmatprep.subr.bf16.mxu1 %v4867_v19  ;;  %1797 = vmatpush1.bf16.msra.mxu0 %v4160_v7 }
  0xfb   : > { %1798 = vmatprep.subr.bf16.mxu0 %v4165_v8 }
  0xfe   : > { %1799 = vmatpush1.bf16.msra.mxu0 %v4163_v9 }
  0xff   : > { %1905 = vmatprep.subr.bf16.mxu0 %v4168_v10 }
 0x100   : > { %3577 = vmatmul.mubr.msk.bf16.vlgmr.msra.gmra.mrb[8].mxu1 %vm476_vm0, %v1362_v51  ;;  %v4189_v51 = vld [vmem:[#allocation4 + $0x74] ss:$8 sps:$4 sm:$0xff]  }
 0x101   : > { %1612 = vmatpush1.bf16.msra.mxu1 %v4880_v23  ;;  %1643 = vmatprep.mubr.bf16.mxu1 %v4514_v0 }
 0x102   : > { %1613 = vmatprep.subr.bf16.mxu1 %v4885_v24 }
 0x105   : > { %1614 = vmatpush1.bf16.msra.mxu1 %v4890_v25 }
 0x106   : > { %2373 = vmatprep.subr.bf16.mxu1 %v4144_v54 }
 0x10c   : > { %3579 = vmatmul.mubr.msk.bf16.vlgmr.msra.gmra.mrb[8].mxu1 %vm476_vm0, %v1607_v61 }
 0x10d   : > { %2374 = vmatpush1.bf16.msra.mxu1 %v4142_v55  ;;  %2405 = vmatprep.mubr.bf16.mxu1 %v4514_v0 }
 0x10e   : > { %2375 = vmatprep.subr.bf16.mxu1 %v4147_v56 }
 0x111   : > { %2376 = vmatpush1.bf16.msra.mxu1 %v4145_v59 }
 0x112   : > { %2377 = vmatprep.subr.bf16.mxu1 %v4150_v60 }
 0x115   : > { %2378 = vmatpush1.bf16.msra.mxu1 %v4148_v62  ;;  %v4190_v62 = vld [vmem:[#allocation4 + $0x100] ss:$8 sps:$4 sm:$0xff]  }
 0x116   : > { %2379 = vmatprep.subr.bf16.mxu1 %v4153_v63 }
 0x119   : > { %2380 = vmatpush1.bf16.msra.mxu1 %v4151_v1 }
 0x11a   : > { %2381 = vmatprep.subr.bf16.mxu1 %v4156_v2  ;;  %v4195_v2 = vld [vmem:[#allocation4 + $0x114] ss:$8 sps:$4 sm:$0xff]  }
 0x11d   : > { %2382 = vmatpush1.bf16.msra.mxu1 %v4154_v3  ;;  %v4193_v3 = vld [vmem:[#allocation4 + $0x110] ss:$8 sps:$4 sm:$0xff]  }
 0x11e   : > { %2383 = vmatprep.subr.bf16.mxu1 %v4159_v4  ;;  %v4198_v4 = vld [vmem:[#allocation4 + $0x124] ss:$8 sps:$4 sm:$0xff]  }
 0x121   : > { %2384 = vmatpush1.bf16.msra.mxu1 %v4157_v5  ;;  %v4196_v5 = vld [vmem:[#allocation4 + $0x120] ss:$8 sps:$4 sm:$0xff]  }
 0x122   : > { %2385 = vmatprep.subr.bf16.mxu1 %v4162_v6  ;;  %v4201_v6 = vld [vmem:[#allocation4 + $0x134] ss:$8 sps:$4 sm:$0xff]  }
 0x125   : > { %2386 = vmatpush1.bf16.msra.mxu1 %v4160_v7  ;;  %v4199_v7 = vld [vmem:[#allocation4 + $0x130] ss:$8 sps:$4 sm:$0xff]  }
 0x126   : > { %2387 = vmatprep.subr.bf16.mxu1 %v4165_v8  ;;  %v4204_v8 = vld [vmem:[#allocation4 + $0x144] ss:$8 sps:$4 sm:$0xff]  }
 0x129   : > { %2388 = vmatpush1.bf16.msra.mxu1 %v4163_v9  ;;  %v4202_v9 = vld [vmem:[#allocation4 + $0x140] ss:$8 sps:$4 sm:$0xff]  }
 0x12a   : > { %2414 = vmatprep.subr.bf16.mxu1 %v4168_v10  ;;  %v4207_v10 = vld [vmem:[#allocation4 + $0x154] ss:$8 sps:$4 sm:$0xff]  }
 0x16f   : > { %v578_v11 = vpop.f32.mrb[0].mxu1 }
 0x170   : > { %v580_v12 = vpop.f32.mrb[1].mxu1 }
 0x171   : > { %v582_v13 = vpop.f32.mrb[2].mxu1 }
 0x172   : > { %v583_v14 = vpop.f32.mrb[3].mxu1  ;;  %v4208_v13 = vld [vmem:[#allocation4 + $0x160] ss:$8 sps:$4 sm:$0xff]  }
 0x173   : > { %v4213_v14 = vld [vmem:[#allocation4 + $0x174] ss:$8 sps:$4 sm:$0xff]  }
 0x17b   : > { %v803_v15 = vpop.f32.mrb[0].mxu0 }
 0x17c   : > { %v3925_v16 = vadd.f32 %v803_v15, %v578_v11  ;;  %v805_v17 = vpop.f32.mrb[1].mxu0  ;;  %v4205_v11 = vld [vmem:[#allocation4 + $0x150] ss:$8 sps:$4 sm:$0xff]  }
 0x17d   : > { %v3926_v18 = vadd.f32 %v805_v17, %v580_v12  ;;  %v807_v19 = vpop.f32.mrb[2].mxu0  ;;  %v4210_v12 = vld [vmem:[#allocation4 + $0x164] ss:$8 sps:$4 sm:$0xff]   ;;  %v4211_v15 = vld [vmem:[#allocation4 + $0x170] ss:$8 sps:$4 sm:$0xff]  }
 0x17e   : > { %v808_v20 = vpop.f32.mrb[3].mxu0  ;;  %v4214_v19 = vld [vmem:[#allocation4 + $0x180] ss:$8 sps:$4 sm:$0xff]  }
 0x17f   : > { %v812_v21 = vmax.f32 %v3925_v16, %v3926_v18  ;;  %v4216_v16 = vld [vmem:[#allocation4 + $0x184] ss:$8 sps:$4 sm:$0xff]  }
 0x1a7   : > { %v1028_v22 = vpop.f32.mrb[4].mxu1 }
 0x1a8   : > { %v1030_v23 = vpop.f32.mrb[5].mxu1 }
 0x1a9   : > { %v1037_v24 = vmax.f32 %v1028_v22, %v1030_v23  ;;  %v1032_v25 = vpop.f32.mrb[6].mxu1  ;;  %v4219_v22 = vld [vmem:[#allocation4 + $0x194] ss:$8 sps:$4 sm:$0xff]   ;;  %v4217_v23 = vld [vmem:[#allocation4 + $0x190] ss:$8 sps:$4 sm:$0xff]  }
 0x1aa   : > { %v1033_v27 = vpop.f32.mrb[7].mxu1  ;;  %v4220_v25 = vld [vmem:[#allocation4 + $0x1a0] ss:$8 sps:$4 sm:$0xff]  }
 0x1ab   : > { %v1038_v28 = vmax.f32 %v812_v21, %v1037_v24  ;;  %v4222_v24 = vld [vmem:[#allocation4 + $0x1a4] ss:$8 sps:$4 sm:$0xff]   ;;  %v4223_v27 = vld [vmem:[#allocation4 + $0x1b0] ss:$8 sps:$4 sm:$0xff]  }
 0x1ad   : > { %v1046_v29 = vadd.f32 %v3526_v26, %v1038_v28  ;;  %v4228_v28 = vld [vmem:[#allocation4 + $0x1c4] ss:$8 sps:$4 sm:$0xff]  }
 0x1af   : > { %v1047_v30 = vmax.f32 %v1046_v29, 0.0  ;;  %v4226_v29 = vld [vmem:[#allocation4 + $0x1c0] ss:$8 sps:$4 sm:$0xff]  }
 0x1b1   : > { %1048 = vst [vmem:[#allocation2] sm:$0x7f] %v1047_v30  ;;  %v4231_v30 = vld [vmem:[#allocation4 + $0x1d4] ss:$8 sps:$4 sm:$0xff]  }
 0x1b3   : > { %v1420_v31 = vpop.f32.mrb[4].mxu0 }
 0x1b4   : > { %v1422_v32 = vpop.f32.mrb[5].mxu0 }
 0x1b5   : > { %v1429_v33 = vmax.f32 %v1420_v31, %v1422_v32  ;;  %v1424_v34 = vpop.f32.mrb[6].mxu0  ;;  %v4229_v31 = vld [vmem:[#allocation4 + $0x1d0] ss:$8 sps:$4 sm:$0xff]   ;;  %v4234_v32 = vld [vmem:[#allocation4 + $0x1e4] ss:$8 sps:$4 sm:$0xff]  }
 0x1b6   : > { %v1425_v35 = vpop.f32.mrb[7].mxu0  ;;  %v4237_v34 = vld [vmem:[#allocation4 + $0x1f4] ss:$8 sps:$4 sm:$0xff]  }
 0x1b7   : > { %v4235_v35 = vld [vmem:[#allocation4 + $0x1f0] ss:$8 sps:$4 sm:$0xff]  }
 0x1b8   : > { %v1946_v36 = vld [vmem:[#allocation2 + $0x1] sm:$0x1f] }
 0x1b9   : > { %v5010_v38 = vpack.c.bf16 %v1946_v36, %v1946_v36  ;;  %v1667_v17 = vld [vmem:[#allocation2] sm:$0x1f] }
 0x1ba   : > { %v1668_v20 = vpack.c.bf16 %v1667_v17, %v1667_v17  ;;  %v4240_v36 = vld [vmem:[#allocation4 + $0x204] ss:$8 sps:$4 sm:$0xff]  }
 0x1bb   : > { %2406 = vmatmul.mubr.bf16.vlgmr.msra.gmra.mrb[12].mxu1 %v5010_v38 }
 0x1bc   : > { %2415 = vmatpush1.bf16.msra.mxu1 %v4166_v37  ;;  %2446 = vmatprep.mubr.bf16.mxu1 %v4514_v0 }
 0x1bd   : > { %2416 = vmatprep.subr.bf16.mxu1 %v4171_v39 }
 0x1c0   : > { %2417 = vmatpush1.bf16.msra.mxu1 %v4169_v40 }
 0x1c1   : > { %2418 = vmatprep.subr.bf16.mxu1 %v4174_v41 }
 0x1c4   : > { %2419 = vmatpush1.bf16.msra.mxu1 %v4172_v42 }
 0x1c5   : > { %2420 = vmatprep.subr.bf16.mxu1 %v4177_v43 }
 0x1c8   : > { %2421 = vmatpush1.bf16.msra.mxu1 %v4175_v44 }
 0x1c9   : > { %2422 = vmatprep.subr.bf16.mxu1 %v4180_v45 }
 0x1cc   : > { %2423 = vmatpush1.bf16.msra.mxu1 %v4178_v46 }
 0x1cd   : > { %2424 = vmatprep.subr.bf16.mxu1 %v4183_v47 }
 0x1d0   : > { %2425 = vmatpush1.bf16.msra.mxu1 %v4181_v48 }
 0x1d1   : > { %2426 = vmatprep.subr.bf16.mxu1 %v4186_v49 }
 0x1d4   : > { %2427 = vmatpush1.bf16.msra.mxu1 %v4184_v50 }
 0x1d5   : > { %2428 = vmatprep.subr.bf16.mxu1 %v4189_v51 }
 0x1d8   : > { %2429 = vmatpush1.bf16.msra.mxu1 %v5014_v52 }
 0x1d9   : > { %2455 = vmatprep.subr.bf16.mxu1 %v5016_v53 }
 0x1df   : > { %v1645_v54 = vpop.f32.mrb[8].mxu1 }
 0x1e0   : > { %v1647_v55 = vpop.f32.mrb[9].mxu1 }
 0x1e1   : > { %v1654_v56 = vmax.f32 %v1645_v54, %v1647_v55  ;;  %v1649_v57 = vpop.f32.mrb[10].mxu1 }
 0x1e2   : > { %v1650_v58 = vpop.f32.mrb[11].mxu1  ;;  %v4263_v57 = vld [vmem:[#allocation7] sm:$0xff]  }
 0x1e3   : > { %v1655_v59 = vmax.f32 %v1429_v33, %v1654_v56  ;;  %v4232_v33 = vld [vmem:[#allocation4 + $0x1e0] ss:$8 sps:$4 sm:$0xff]   ;;  %v4515_v58 = vmov 0.0  }
 0x1e4   : > { %v4262_v56 = vld [vmem:[#allocation7 + $0x40] sm:$0xff]  }
 0x1e5   : > { %v1663_v60 = vadd.f32 %v3526_v26, %v1655_v59  ;;  %v4225_v26 = vld [vmem:[#allocation4 + $0x1b4] ss:$8 sps:$4 sm:$0xff]   ;;  %v4265_v59 = vld [vmem:[#allocation7 + $0x8] sm:$0xff]  }
 0x1e7   : > { %v1664_v61 = vmax.f32 %v1663_v60, 0.0  ;;  %v4266_v60 = vld [vmem:[#allocation7 + $0x50] sm:$0xff]  }
 0x1e9   : > { %1666 = vst [vmem:[#allocation2 + $0x8] sm:$0x7f] %v1664_v61  ;;  %v4267_v61 = vld [vmem:[#allocation7 + $0x10] sm:$0xff]  }
 0x1f0   : > { %v1685_v63 = vld [vmem:[#allocation2 + $0x8] sm:$0x1f] }
 0x1f1   : > { %v1686_v1 = vpack.c.bf16 %v1685_v63, %v1685_v63  ;;  %v2088_v18 = vld [vmem:[#allocation2 + $0x9] sm:$0x1f]  ;;  %v4269_v63 = vld [vmem:[#allocation7 + $0x18] sm:$0xff]  }
 0x1f2   : > { %v5024_v21 = vpack.c.bf16 %v2088_v18, %v2088_v18  ;;  %v2541_v54 = vld [vmem:[#allocation2 + $0xa] sm:$0x1f]  ;;  %v3661_v18 = vld [vmem:[%s5174_s7] ss:$0 sm:$0xff] }
 0x1f3   : > { %1817 = vmatmul.mubr.bf16.vlgmr.msra.gmra.mrb[8].mxu0 %v1686_v1  ;;  %2447 = vmatmul.mubr.bf16.vlgmr.msra.gmra.mrb[12].mxu1 %v1686_v1  ;;  %v2542_v55 = vpack.c.bf16 %v2541_v54, %v2541_v54  ;;  %v4270_v1 = vld [vmem:[#allocation7 + $0x60] sm:$0xff]   ;;  %v4301_v54 = vld [vmem:[#allocation7 + $0x138] sm:$0xff]  }
 0x1f4   : > { %1906 = vmatpush1.bf16.msra.mxu0 %v4166_v37  ;;  %2456 = vmatpush1.bf16.msra.mxu1 %v4190_v62  ;;  %v2230_v37 = vld [vmem:[#allocation2 + $0x2] sm:$0x1f] }
 0x1f5   : > { %1907 = vmatprep.subr.bf16.mxu0 %v4171_v39  ;;  %2457 = vmatprep.subr.bf16.mxu1 %v4195_v2  ;;  %v4238_v39 = vld [vmem:[#allocation4 + $0x200] ss:$8 sps:$4 sm:$0xff]  }
 0x1f6   : > { %1937 = vmatprep.mubr.bf16.mxu0 %v4514_v0  ;;  %2487 = vmatprep.mubr.bf16.mxu1 %v4514_v0 }
 0x1f8   : > { %1908 = vmatpush1.bf16.msra.mxu0 %v4169_v40  ;;  %2458 = vmatpush1.bf16.msra.mxu1 %v4193_v3  ;;  %v5029_v40 = vpack.c.bf16 %v2230_v37, %v2230_v37  ;;  %v4288_v37 = vld [vmem:[#allocation7 + $0xa8] sm:$0xff]  }
 0x1f9   : > { %1909 = vmatprep.subr.bf16.mxu0 %v4174_v41  ;;  %2459 = vmatprep.subr.bf16.mxu1 %v4198_v4  ;;  %v4243_v41 = vld [vmem:[#allocation4 + $0x214] ss:$8 sps:$4 sm:$0xff]  }
 0x1fc   : > { %1910 = vmatpush1.bf16.msra.mxu0 %v4172_v42  ;;  %2460 = vmatpush1.bf16.msra.mxu1 %v4196_v5  ;;  %v4241_v42 = vld [vmem:[#allocation4 + $0x210] ss:$8 sps:$4 sm:$0xff]  }
 0x1fd   : > { %1911 = vmatprep.subr.bf16.mxu0 %v4177_v43  ;;  %2461 = vmatprep.subr.bf16.mxu1 %v4201_v6  ;;  %v4246_v43 = vld [vmem:[#allocation4 + $0x224] ss:$8 sps:$4 sm:$0xff]  }
 0x200   : > { %1912 = vmatpush1.bf16.msra.mxu0 %v4175_v44  ;;  %2462 = vmatpush1.bf16.msra.mxu1 %v4199_v7  ;;  %v4244_v44 = vld [vmem:[#allocation4 + $0x220] ss:$8 sps:$4 sm:$0xff]  }
 0x201   : > { %1913 = vmatprep.subr.bf16.mxu0 %v4180_v45  ;;  %2463 = vmatprep.subr.bf16.mxu1 %v4204_v8  ;;  %v4249_v45 = vld [vmem:[#allocation4 + $0x234] ss:$8 sps:$4 sm:$0xff]  }
 0x204   : > { %1914 = vmatpush1.bf16.msra.mxu0 %v4178_v46  ;;  %2464 = vmatpush1.bf16.msra.mxu1 %v4202_v9  ;;  %v4252_v46 = vld [vmem:[#allocation4 + $0x244] ss:$8 sps:$4 sm:$0xff]  }
 0x205   : > { %1915 = vmatprep.subr.bf16.mxu0 %v4183_v47  ;;  %2465 = vmatprep.subr.bf16.mxu1 %v4207_v10  ;;  %v4250_v47 = vld [vmem:[#allocation4 + $0x240] ss:$8 sps:$4 sm:$0xff]  }
 0x208   : > { %1916 = vmatpush1.bf16.msra.mxu0 %v4181_v48  ;;  %2466 = vmatpush1.bf16.msra.mxu1 %v4205_v11  ;;  %v4255_v48 = vld [vmem:[#allocation4 + $0x254] ss:$8 sps:$4 sm:$0xff]  }
 0x209   : > { %1917 = vmatprep.subr.bf16.mxu0 %v4186_v49  ;;  %2467 = vmatprep.subr.bf16.mxu1 %v4210_v12  ;;  %v4253_v49 = vld [vmem:[#allocation4 + $0x250] ss:$8 sps:$4 sm:$0xff]  }
 0x20c   : > { %1918 = vmatpush1.bf16.msra.mxu0 %v4184_v50  ;;  %2468 = vmatpush1.bf16.msra.mxu1 %v4208_v13  ;;  %v4258_v50 = vld [vmem:[#allocation4 + $0x264] ss:$8 sps:$4 sm:$0xff]  }
 0x20d   : > { %1919 = vmatprep.subr.bf16.mxu0 %v4189_v51  ;;  %2469 = vmatprep.subr.bf16.mxu1 %v4213_v14  ;;  %v4256_v51 = vld [vmem:[#allocation4 + $0x260] ss:$8 sps:$4 sm:$0xff]  }
 0x210   : > { %1920 = vmatpush1.bf16.msra.mxu0 %v5014_v52  ;;  %2470 = vmatpush1.bf16.msra.mxu1 %v4211_v15  ;;  %v4261_v52 = vld [vmem:[#allocation4 + $0x274] ss:$8 sps:$4 sm:$0xff]  }
 0x211   : > { %2045 = vmatprep.subr.bf16.mxu0 %v5016_v53  ;;  %2498 = vmatprep.subr.bf16.mxu1 %v4216_v16  ;;  %v4259_v53 = vld [vmem:[#allocation4 + $0x270] ss:$8 sps:$4 sm:$0xff]  }
 0x213   : > { %1938 = vmatmul.mubr.bf16.vlgmr.msra.gmra.mrb[8].mxu0 %v1668_v20  ;;  %2488 = vmatmul.mubr.bf16.vlgmr.msra.gmra.mrb[12].mxu1 %v5024_v21 }
 0x214   : > { %2046 = vmatpush1.bf16.msra.mxu0 %v4190_v62  ;;  %2499 = vmatpush1.bf16.msra.mxu1 %v4214_v19  ;;  %v4268_v62 = vld [vmem:[#allocation7 + $0x58] sm:$0xff]  }
 0x215   : > { %2047 = vmatprep.subr.bf16.mxu0 %v4195_v2  ;;  %2500 = vmatprep.subr.bf16.mxu1 %v4219_v22  ;;  %v4271_v2 = vld [vmem:[#allocation7 + $0x20] sm:$0xff]  }
 0x216   : > { %2077 = vmatprep.mubr.bf16.mxu0 %v4514_v0  ;;  %2530 = vmatprep.mubr.bf16.mxu1 %v4514_v0 }
 0x218   : > { %2048 = vmatpush1.bf16.msra.mxu0 %v4193_v3  ;;  %2501 = vmatpush1.bf16.msra.mxu1 %v4217_v23  ;;  %v4272_v3 = vld [vmem:[#allocation7 + $0x68] sm:$0xff]  }
 0x219   : > { %2049 = vmatprep.subr.bf16.mxu0 %v4198_v4  ;;  %2502 = vmatprep.subr.bf16.mxu1 %v4222_v24  ;;  %v4273_v4 = vld [vmem:[#allocation7 + $0x28] sm:$0xff]  }
 0x21c   : > { %2050 = vmatpush1.bf16.msra.mxu0 %v4196_v5  ;;  %2503 = vmatpush1.bf16.msra.mxu1 %v4220_v25  ;;  %v4274_v5 = vld [vmem:[#allocation7 + $0x70] sm:$0xff]  }
 0x21d   : > { %2051 = vmatprep.subr.bf16.mxu0 %v4201_v6  ;;  %2504 = vmatprep.subr.bf16.mxu1 %v4225_v26  ;;  %v4275_v6 = vld [vmem:[#allocation7 + $0x30] sm:$0xff]  }
 0x220   : > { %2052 = vmatpush1.bf16.msra.mxu0 %v4199_v7  ;;  %2505 = vmatpush1.bf16.msra.mxu1 %v4223_v27  ;;  %v4276_v7 = vld [vmem:[#allocation7 + $0x78] sm:$0xff]  }
 0x221   : > { %2053 = vmatprep.subr.bf16.mxu0 %v4204_v8  ;;  %2506 = vmatprep.subr.bf16.mxu1 %v4228_v28  ;;  %v4277_v8 = vld [vmem:[#allocation7 + $0x38] sm:$0xff]  }
 0x224   : > { %2054 = vmatpush1.bf16.msra.mxu0 %v4202_v9  ;;  %2507 = vmatpush1.bf16.msra.mxu1 %v4226_v29 }
 0x225   : > { %2055 = vmatprep.subr.bf16.mxu0 %v4207_v10  ;;  %2508 = vmatprep.subr.bf16.mxu1 %v4231_v30 }
 0x228   : > { %2056 = vmatpush1.bf16.msra.mxu0 %v4205_v11  ;;  %2509 = vmatpush1.bf16.msra.mxu1 %v4229_v31 }
 0x229   : > { %2057 = vmatprep.subr.bf16.mxu0 %v4210_v12  ;;  %2510 = vmatprep.subr.bf16.mxu1 %v4234_v32 }
 0x22c   : > { %2058 = vmatpush1.bf16.msra.mxu0 %v4208_v13  ;;  %2511 = vmatpush1.bf16.msra.mxu1 %v4232_v33 }
 0x22d   : > { %2059 = vmatprep.subr.bf16.mxu0 %v4213_v14  ;;  %2512 = vmatprep.subr.bf16.mxu1 %v4237_v34 }
 0x230   : > { %2060 = vmatpush1.bf16.msra.mxu0 %v4211_v15  ;;  %2513 = vmatpush1.bf16.msra.mxu1 %v4235_v35 }
 0x231   : > { %2187 = vmatprep.subr.bf16.mxu0 %v4216_v16  ;;  %2543 = vmatprep.subr.bf16.mxu1 %v4240_v36 }
 0x233   : > { %2078 = vmatmul.mubr.bf16.vlgmr.msra.gmra.mrb[8].mxu0 %v5010_v38  ;;  %2531 = vmatmul.mubr.bf16.vlgmr.msra.gmra.mrb[12].mxu1 %v5029_v40  ;;  %v4247_v38 = vld [vmem:[#allocation4 + $0x230] ss:$8 sps:$4 sm:$0xff]  }
 0x234   : > { %2188 = vmatpush1.bf16.msra.mxu0 %v4214_v19  ;;  %2544 = vmatpush1.bf16.msra.mxu1 %v4238_v39 }
 0x235   : > { %2189 = vmatprep.subr.bf16.mxu0 %v4219_v22  ;;  %2545 = vmatprep.subr.bf16.mxu1 %v4243_v41 }
 0x236   : > { %2219 = vmatprep.mubr.bf16.mxu0 %v4514_v0  ;;  %2575 = vmatprep.mubr.bf16.mxu1 %v4514_v0 }
 0x238   : > { %2190 = vmatpush1.bf16.msra.mxu0 %v4217_v23  ;;  %2546 = vmatpush1.bf16.msra.mxu1 %v4241_v42  ;;  %v4278_v23 = vld [vmem:[#allocation7 + $0x80] sm:$0xff]  }
 0x239   : > { %2191 = vmatprep.subr.bf16.mxu0 %v4222_v24  ;;  %2547 = vmatprep.subr.bf16.mxu1 %v4246_v43 }
 0x23c   : > { %2192 = vmatpush1.bf16.msra.mxu0 %v4220_v25  ;;  %2548 = vmatpush1.bf16.msra.mxu1 %v4244_v44 }
 0x23d   : > { %2193 = vmatprep.subr.bf16.mxu0 %v4225_v26  ;;  %2549 = vmatprep.subr.bf16.mxu1 %v4249_v45  ;;  %v4279_v26 = vld [vmem:[#allocation7 + $0xc0] sm:$0xff]  }
 0x240   : > { %2194 = vmatpush1.bf16.msra.mxu0 %v4223_v27  ;;  %2550 = vmatpush1.bf16.msra.mxu1 %v4247_v38 }
 0x241   : > { %2195 = vmatprep.subr.bf16.mxu0 %v4228_v28  ;;  %2551 = vmatprep.subr.bf16.mxu1 %v4252_v46 }
 0x244   : > { %2196 = vmatpush1.bf16.msra.mxu0 %v4226_v29  ;;  %2552 = vmatpush1.bf16.msra.mxu1 %v4250_v47  ;;  %v4280_v29 = vld [vmem:[#allocation7 + $0x88] sm:$0xff]  }
 0x245   : > { %2197 = vmatprep.subr.bf16.mxu0 %v4231_v30  ;;  %2553 = vmatprep.subr.bf16.mxu1 %v4255_v48  ;;  %v4281_v30 = vld [vmem:[#allocation7 + $0xc8] sm:$0xff]  }
 0x248   : > { %2198 = vmatpush1.bf16.msra.mxu0 %v4229_v31  ;;  %2554 = vmatpush1.bf16.msra.mxu1 %v4253_v49  ;;  %v4282_v31 = vld [vmem:[#allocation7 + $0x90] sm:$0xff]  }
 0x249   : > { %2199 = vmatprep.subr.bf16.mxu0 %v4234_v32  ;;  %2555 = vmatprep.subr.bf16.mxu1 %v4258_v50  ;;  %v4283_v32 = vld [vmem:[#allocation7 + $0xd0] sm:$0xff]  }
 0x24c   : > { %2200 = vmatpush1.bf16.msra.mxu0 %v4232_v33  ;;  %2556 = vmatpush1.bf16.msra.mxu1 %v4256_v51  ;;  %v4284_v33 = vld [vmem:[#allocation7 + $0x98] sm:$0xff]  }
 0x24d   : > { %2201 = vmatprep.subr.bf16.mxu0 %v4237_v34  ;;  %2557 = vmatprep.subr.bf16.mxu1 %v4261_v52  ;;  %v4285_v34 = vld [vmem:[#allocation7 + $0xd8] sm:$0xff]  }
 0x250   : > { %2202 = vmatpush1.bf16.msra.mxu0 %v4235_v35  ;;  %2558 = vmatpush1.bf16.msra.mxu1 %v4259_v53  ;;  %v4286_v35 = vld [vmem:[#allocation7 + $0xa0] sm:$0xff]  }
 0x251   : > { %2329 = vmatprep.subr.bf16.mxu0 %v4240_v36  ;;  %3805 = vmatprep.subr.bf16.mxu1 %v4515_v58  ;;  %v4287_v36 = vld [vmem:[#allocation7 + $0xe0] sm:$0xff]  }
 0x253   : > { %2220 = vmatmul.mubr.bf16.vlgmr.msra.gmra.mrb[8].mxu0 %v5024_v21  ;;  %2576 = vmatmul.mubr.bf16.vlgmr.msra.gmra.mrb[12].mxu1 %v2542_v55 }
 0x254   : > { %2330 = vmatpush1.bf16.msra.mxu0 %v4238_v39  ;;  %2361 = vmatprep.mubr.bf16.mxu0 %v4514_v0  ;;  %v4264_v0 = vld [vmem:[#allocation7 + $0x48] sm:$0xff]  }
 0x255   : > { %2331 = vmatprep.subr.bf16.mxu0 %v4243_v41  ;;  %3806 = vmatpush3.bf16.msra.mxu1 %v4263_v57  ;;  %v4289_v39 = vld [vmem:[#allocation7 + $0xe8] sm:$0xff]   ;;  %v4291_v41 = vld [vmem:[#allocation7 + $0xf0] sm:$0xff]   ;;  %v4302_v57 = vld [vmem:[#allocation9] sm:$0xff]  }
 0x256   : > { %3807 = vmatprep.subr.bf16.mxu1 %v4515_v58  ;;  %3821 = vmatprep.mubr.msk.bf16.mxu1 %vm4516_vm1, %v4515_v58 }
 0x258   : > { %2332 = vmatpush1.bf16.msra.mxu0 %v4241_v42  ;;  %v4292_v42 = vld [vmem:[#allocation7 + $0xb8] sm:$0xff]  }
 0x259   : > { %2333 = vmatprep.subr.bf16.mxu0 %v4246_v43  ;;  %3808 = vmatpush3.bf16.msra.mxu1 %v4265_v59  ;;  %v4293_v43 = vld [vmem:[#allocation7 + $0xf8] sm:$0xff]   ;;  %v4304_v59 = vld [vmem:[#allocation9 + $0x10] sm:$0xff]  }
 0x25a   : > { %3809 = vmatprep.subr.bf16.mxu1 %v4515_v58 }
 0x25c   : > { %2334 = vmatpush1.bf16.msra.mxu0 %v4244_v44 }
 0x25d   : > { %2335 = vmatprep.subr.bf16.mxu0 %v4249_v45  ;;  %3810 = vmatpush3.bf16.msra.mxu1 %v4267_v61  ;;  %v4306_v61 = vld [vmem:[#allocation9 + $0x20] sm:$0xff]  }
 0x25e   : > { %3811 = vmatprep.subr.bf16.mxu1 %v4515_v58 }
 0x260   : > { %2336 = vmatpush1.bf16.msra.mxu0 %v4247_v38  ;;  %v4294_v38 = vld [vmem:[#allocation7 + $0x100] sm:$0xff]  }
 0x261   : > { %2337 = vmatprep.subr.bf16.mxu0 %v4252_v46  ;;  %3812 = vmatpush3.bf16.msra.mxu1 %v4269_v63  ;;  %v4308_v63 = vld [vmem:[#allocation9 + $0x30] sm:$0xff]  }
 0x262   : > { %3813 = vmatprep.subr.bf16.mxu1 %v4515_v58 }
 0x264   : > { %2338 = vmatpush1.bf16.msra.mxu0 %v4250_v47 }
 0x265   : > { %2339 = vmatprep.subr.bf16.mxu0 %v4255_v48  ;;  %3814 = vmatpush3.bf16.msra.mxu1 %v4271_v2  ;;  %v4295_v48 = vld [vmem:[#allocation7 + $0x108] sm:$0xff]   ;;  %v4310_v2 = vld [vmem:[#allocation10] sm:$0xff]  }
 0x266   : > { %3815 = vmatprep.subr.bf16.mxu1 %v4515_v58 }
 0x268   : > { %2340 = vmatpush1.bf16.msra.mxu0 %v4253_v49  ;;  %v4296_v49 = vld [vmem:[#allocation7 + $0x110] sm:$0xff]  }
 0x269   : > { %2341 = vmatprep.subr.bf16.mxu0 %v4258_v50  ;;  %3816 = vmatpush3.bf16.msra.mxu1 %v4273_v4  ;;  %v4297_v50 = vld [vmem:[#allocation7 + $0x118] sm:$0xff]   ;;  %v4312_v4 = vld [vmem:[#allocation10 + $0x10] sm:$0xff]  }
 0x26a   : > { %3817 = vmatprep.subr.bf16.mxu1 %v4515_v58 }
 0x26c   : > { %2342 = vmatpush1.bf16.msra.mxu0 %v4256_v51  ;;  %v4298_v51 = vld [vmem:[#allocation7 + $0x120] sm:$0xff]  }
 0x26d   : > { %2343 = vmatprep.subr.bf16.mxu0 %v4261_v52  ;;  %3818 = vmatpush3.bf16.msra.mxu1 %v4275_v6  ;;  %v4299_v52 = vld [vmem:[#allocation7 + $0x128] sm:$0xff]   ;;  %v4314_v6 = vld [vmem:[#allocation10 + $0x20] sm:$0xff]  }
 0x26e   : > { %3819 = vmatprep.subr.bf16.mxu1 %v4515_v58 }
 0x270   : > { %2344 = vmatpush1.bf16.msra.mxu0 %v4259_v53  ;;  %v4300_v53 = vld [vmem:[#allocation7 + $0x130] sm:$0xff]  }
 0x271   : > { %3785 = vmatprep.subr.bf16.mxu0 %v4515_v58  ;;  %3820 = vmatpush3.bf16.msra.mxu1 %v4277_v8 }
 0x272   : > { %3845 = vmatprep.subr.bf16.mxu1 %v4515_v58 }
 0x273   : > { %2362 = vmatmul.mubr.bf16.vlgmr.msra.gmra.mrb[8].mxu0 %v5029_v40  ;;  %v4290_v40 = vld [vmem:[#allocation7 + $0xb0] sm:$0xff]  }
 0x274   : > { %3786 = vmatpush3.bf16.msra.mxu0 %v4262_v56  ;;  %3801 = vmatprep.mubr.msk.bf16.mxu0 %vm4516_vm1, %v4515_v58 }
 0x275   : > { %3787 = vmatprep.subr.bf16.mxu0 %v4515_v58 }
 0x278   : > { %3788 = vmatpush3.bf16.msra.mxu0 %v4264_v0  ;;  %v4303_v0 = vld [vmem:[#allocation9 + $0x8] sm:$0xff]  }
 0x279   : > { %3789 = vmatprep.subr.bf16.mxu0 %v4515_v58 }
 0x27c   : > { %3790 = vmatpush3.bf16.msra.mxu0 %v4266_v60  ;;  %v4305_v60 = vld [vmem:[#allocation9 + $0x18] sm:$0xff]  }
 0x27d   : > { %3791 = vmatprep.subr.bf16.mxu0 %v4515_v58 }
 0x280   : > { %3792 = vmatpush3.bf16.msra.mxu0 %v4268_v62  ;;  %v4307_v62 = vld [vmem:[#allocation9 + $0x28] sm:$0xff]  }
 0x281   : > { %3793 = vmatprep.subr.bf16.mxu0 %v4515_v58 }
 0x284   : > { %3794 = vmatpush3.bf16.msra.mxu0 %v4270_v1  ;;  %v4309_v1 = vld [vmem:[#allocation9 + $0x38] sm:$0xff]  }
 0x285   : > { %3795 = vmatprep.subr.bf16.mxu0 %v4515_v58 }
 0x288   : > { %3796 = vmatpush3.bf16.msra.mxu0 %v4272_v3  ;;  %v4311_v3 = vld [vmem:[#allocation10 + $0x8] sm:$0xff]  }
 0x289   : > { %3797 = vmatprep.subr.bf16.mxu0 %v4515_v58 }
 0x28c   : > { %3798 = vmatpush3.bf16.msra.mxu0 %v4274_v5  ;;  %v4313_v5 = vld [vmem:[#allocation10 + $0x18] sm:$0xff]  }
 0x28d   : > { %3799 = vmatprep.subr.bf16.mxu0 %v4515_v58 }
 0x290   : > { %3800 = vmatpush3.bf16.msra.mxu0 %v4276_v7  ;;  %v4315_v7 = vld [vmem:[#allocation10 + $0x28] sm:$0xff]  }
 0x291   : > { %3825 = vmatprep.subr.bf16.mxu0 %v4515_v58 }
 0x326   : > { %v2577_v9 = vpop.f32.mrb[12].mxu1 }
 0x327   : > { %v2579_v10 = vpop.f32.mrb[13].mxu1 }
 0x328   : > { %v2586_v11 = vmax.f32 %v2577_v9, %v2579_v10  ;;  %v2581_v12 = vpop.f32.mrb[14].mxu1 }
 0x329   : > { %v2582_v13 = vpop.f32.mrb[15].mxu1 }
 0x346   : > { %v2363_v14 = vpop.f32.mrb[8].mxu0 }
 0x347   : > { %v2365_v15 = vpop.f32.mrb[9].mxu0 }
 0x348   : > { %v2372_v16 = vmax.f32 %v2363_v14, %v2365_v15  ;;  %v2367_v17 = vpop.f32.mrb[10].mxu0 }
 0x349   : > { %v2368_v19 = vpop.f32.mrb[11].mxu0 }
 0x34a   : > { %v2587_v20 = vmax.f32 %v2372_v16, %v2586_v11 }
 0x34c   : > { %v2595_v21 = vadd.f32 %v3661_v18, %v2587_v20 }
 0x34e   : > { %v2596_v22 = vmax.f32 %v2595_v21, 0.0 }
 0x350   : > { %2597 = vst [vmem:[#allocation3] sm:$0x1f] %v2596_v22 }
 0x357   : > { %v2616_v24 = vld [vmem:[#allocation3 + $0x1] sm:$0x1]  ;;  %v2598_v25 = vld [vmem:[#allocation3] sm:$0x1]  ;;  %v2811_v44 = vld [vmem:[#allocation3 + $0x2] sm:$0x1] }
 0x358   : > { %v2617_v27 = vpack.c.bf16 %v2616_v24, %v2616_v24  ;;  %v2599_v28 = vpack.c.bf16 %v2598_v25, %v2598_v25  ;;  %v2919_v45 = vld [vmem:[#allocation3 + $0x3] sm:$0x1]  ;;  %v2812_v46 = vpack.c.bf16 %v2811_v44, %v2811_v44  ;;  %v3027_v55 = vld [vmem:[#allocation3 + $0x4] sm:$0x1] }
 0x359   : > { %v2920_v47 = vpack.c.bf16 %v2919_v45, %v2919_v45  ;;  %v3028_v56 = vpack.c.bf16 %v3027_v55, %v3027_v55 }
 0x35a   : > { %3802 = vmatmul.mubr.bf16.vlgmr.msra.gmra.mrb[12].mxu0 %v2617_v27  ;;  %3822 = vmatmul.mubr.bf16.vlgmr.msra.gmra.mrb[16].mxu1 %v2599_v28  ;;  %v3135_v28 = vld [vmem:[%s5175_s8] sm:$0x1] }
 0x35b   : > { %3826 = vmatpush3.bf16.msra.mxu0 %v4278_v23  ;;  %3846 = vmatpush3.bf16.msra.mxu1 %v4279_v26 }
 0x35c   : > { %3827 = vmatprep.subr.bf16.mxu0 %v4515_v58  ;;  %3847 = vmatprep.subr.bf16.mxu1 %v4515_v58 }
 0x35d   : > { %3841 = vmatprep.mubr.msk.bf16.mxu0 %vm4516_vm1, %v4515_v58  ;;  %3861 = vmatprep.mubr.msk.bf16.mxu1 %vm4516_vm1, %v4515_v58 }
 0x35f   : > { %3828 = vmatpush3.bf16.msra.mxu0 %v4280_v29  ;;  %3848 = vmatpush3.bf16.msra.mxu1 %v4281_v30 }
 0x360   : > { %3829 = vmatprep.subr.bf16.mxu0 %v4515_v58  ;;  %3849 = vmatprep.subr.bf16.mxu1 %v4515_v58 }
 0x363   : > { %3830 = vmatpush3.bf16.msra.mxu0 %v4282_v31  ;;  %3850 = vmatpush3.bf16.msra.mxu1 %v4283_v32 }
 0x364   : > { %3831 = vmatprep.subr.bf16.mxu0 %v4515_v58  ;;  %3851 = vmatprep.subr.bf16.mxu1 %v4515_v58 }
 0x367   : > { %3832 = vmatpush3.bf16.msra.mxu0 %v4284_v33  ;;  %3852 = vmatpush3.bf16.msra.mxu1 %v4285_v34 }
 0x368   : > { %3833 = vmatprep.subr.bf16.mxu0 %v4515_v58  ;;  %3853 = vmatprep.subr.bf16.mxu1 %v4515_v58 }
 0x36b   : > { %3834 = vmatpush3.bf16.msra.mxu0 %v4286_v35  ;;  %3854 = vmatpush3.bf16.msra.mxu1 %v4287_v36  ;;  %v4316_v36 = vld [vmem:[#allocation10 + $0x30] sm:$0xff]  }
 0x36c   : > { %3835 = vmatprep.subr.bf16.mxu0 %v4515_v58  ;;  %3855 = vmatprep.subr.bf16.mxu1 %v4515_v58 }
 0x36f   : > { %3836 = vmatpush3.bf16.msra.mxu0 %v4288_v37  ;;  %3856 = vmatpush3.bf16.msra.mxu1 %v4289_v39  ;;  %v4317_v37 = vld [vmem:[#allocation10 + $0x38] sm:$0xff]   ;;  %v3155_v39 = vld [vmem:[%s5176_s9] sm:$0x1] }
 0x370   : > { %3837 = vmatprep.subr.bf16.mxu0 %v4515_v58  ;;  %3857 = vmatprep.subr.bf16.mxu1 %v4515_v58 }
 0x373   : > { %3838 = vmatpush3.bf16.msra.mxu0 %v4290_v40  ;;  %3858 = vmatpush3.bf16.msra.mxu1 %v4291_v41 }
 0x374   : > { %3839 = vmatprep.subr.bf16.mxu0 %v4515_v58  ;;  %3859 = vmatprep.subr.bf16.mxu1 %v4515_v58 }
 0x377   : > { %3840 = vmatpush3.bf16.msra.mxu0 %v4292_v42  ;;  %3860 = vmatpush3.bf16.msra.mxu1 %v4293_v43 }
 0x378   : > { %3865 = vmatprep.subr.bf16.mxu0 %v4515_v58  ;;  %3885 = vmatprep.subr.bf16.mxu1 %v4515_v58 }
 0x37a   : > { %3842 = vmatmul.mubr.bf16.vlgmr.msra.gmra.mrb[16].mxu0 %v2812_v46  ;;  %3862 = vmatmul.mubr.bf16.vlgmr.msra.gmra.mrb[20].mxu1 %v2920_v47 }
 0x37b   : > { %3866 = vmatpush3.bf16.msra.mxu0 %v4294_v38  ;;  %3881 = vmatprep.mubr.msk.bf16.mxu0 %vm4516_vm1, %v4515_v58 }
 0x37c   : > { %3867 = vmatprep.subr.bf16.mxu0 %v4515_v58  ;;  %3901 = vmatprep.mubr.msk.bf16.mxu1 %vm4516_vm1, %v4515_v58 }
 0x37d   : > { %3886 = vmatpush3.bf16.msra.mxu1 %v4302_v57 }
 0x37e   : > { %3887 = vmatprep.subr.bf16.mxu1 %v4515_v58 }
 0x37f   : > { %3868 = vmatpush3.bf16.msra.mxu0 %v4295_v48 }
 0x380   : > { %3869 = vmatprep.subr.bf16.mxu0 %v4515_v58 }
 0x381   : > { %3888 = vmatpush3.bf16.msra.mxu1 %v4303_v0 }
 0x382   : > { %3889 = vmatprep.subr.bf16.mxu1 %v4515_v58 }
 0x383   : > { %3870 = vmatpush3.bf16.msra.mxu0 %v4296_v49 }
 0x384   : > { %3871 = vmatprep.subr.bf16.mxu0 %v4515_v58 }
 0x385   : > { %3890 = vmatpush3.bf16.msra.mxu1 %v4304_v59 }
 0x386   : > { %3891 = vmatprep.subr.bf16.mxu1 %v4515_v58 }
 0x387   : > { %3872 = vmatpush3.bf16.msra.mxu0 %v4297_v50 }
 0x388   : > { %3873 = vmatprep.subr.bf16.mxu0 %v4515_v58 }
 0x389   : > { %3892 = vmatpush3.bf16.msra.mxu1 %v4305_v60 }
 0x38a   : > { %3893 = vmatprep.subr.bf16.mxu1 %v4515_v58 }
 0x38b   : > { %3874 = vmatpush3.bf16.msra.mxu0 %v4298_v51 }
 0x38c   : > { %3875 = vmatprep.subr.bf16.mxu0 %v4515_v58 }
 0x38d   : > { %3894 = vmatpush3.bf16.msra.mxu1 %v4306_v61 }
 0x38e   : > { %3895 = vmatprep.subr.bf16.mxu1 %v4515_v58 }
 0x38f   : > { %3876 = vmatpush3.bf16.msra.mxu0 %v4299_v52 }
 0x390   : > { %3877 = vmatprep.subr.bf16.mxu0 %v4515_v58 }
 0x391   : > { %3896 = vmatpush3.bf16.msra.mxu1 %v4307_v62 }
 0x392   : > { %3897 = vmatprep.subr.bf16.mxu1 %v4515_v58 }
 0x393   : > { %3878 = vmatpush3.bf16.msra.mxu0 %v4300_v53 }
 0x394   : > { %3879 = vmatprep.subr.bf16.mxu0 %v4515_v58 }
 0x395   : > { %3898 = vmatpush3.bf16.msra.mxu1 %v4308_v63 }
 0x396   : > { %3899 = vmatprep.subr.bf16.mxu1 %v4515_v58 }
 0x397   : > { %3880 = vmatpush3.bf16.msra.mxu0 %v4301_v54 }
 0x398   : > { %3905 = vmatprep.subr.bf16.mxu0 %v4515_v58 }
 0x399   : > { %3900 = vmatpush3.bf16.msra.mxu1 %v4309_v1 }
 0x39a   : > { %3882 = vmatmul.mubr.bf16.vlgmr.msra.gmra.mrb[20].mxu0 %v3028_v56 }
 0x39b   : > { %3921 = vmatprep.mubr.msk.bf16.mxu0 %vm4516_vm1, %v4515_v58  ;;  %3906 = vmatpush3.bf16.msra.mxu0 %v4310_v2 }
 0x39c   : > { %3907 = vmatprep.subr.bf16.mxu0 %v4515_v58 }
 0x39f   : > { %3908 = vmatpush3.bf16.msra.mxu0 %v4311_v3 }
 0x3a0   : > { %3909 = vmatprep.subr.bf16.mxu0 %v4515_v58 }
 0x3a3   : > { %3910 = vmatpush3.bf16.msra.mxu0 %v4312_v4 }
 0x3a4   : > { %3911 = vmatprep.subr.bf16.mxu0 %v4515_v58 }
 0x3a7   : > { %3912 = vmatpush3.bf16.msra.mxu0 %v4313_v5 }
 0x3a8   : > { %3913 = vmatprep.subr.bf16.mxu0 %v4515_v58 }
 0x3ab   : > { %3914 = vmatpush3.bf16.msra.mxu0 %v4314_v6 }
 0x3ac   : > { %3915 = vmatprep.subr.bf16.mxu0 %v4515_v58 }
 0x3af   : > { %3916 = vmatpush3.bf16.msra.mxu0 %v4315_v7 }
 0x3b0   : > { %3917 = vmatprep.subr.bf16.mxu0 %v4515_v58 }
 0x3b3   : > { %3918 = vmatpush3.bf16.msra.mxu0 %v4316_v36 }
 0x3b4   : > { %3919 = vmatprep.subr.bf16.mxu0 %v4515_v58  ;;  %v3262_v58 = vld [vmem:[%s5177_s10] sm:$0x1] }
 0x3b7   : > { %3920 = vmatpush3.bf16.msra.mxu0 %v4317_v37 }
 0x42d   : > { %v2717_v8 = vpop.f32.mrb[12].mxu0  ;;  %v2805_v9 = vpop.f32.mrb[16].mxu1 }
 0x42e   : > { %v2806_v10 = vadd.f32 %v2805_v9, %v2717_v8  ;;  %v3803_v11 = vpop.f32.mrb[13].mxu0  ;;  %v3823_v12 = vpop.f32.mrb[17].mxu1 }
 0x42f   : > { %v2720_v13 = vpop.f32.mrb[14].mxu0  ;;  %v2808_v14 = vpop.f32.mrb[18].mxu1 }
 0x430   : > { %v3804_v15 = vpop.f32.mrb[15].mxu0  ;;  %v3824_v16 = vpop.f32.mrb[19].mxu1 }
 0x44d   : > { %v2912_v17 = vpop.f32.mrb[16].mxu0  ;;  %v3020_v18 = vpop.f32.mrb[20].mxu1 }
 0x44e   : > { %v2918_v19 = vadd.f32 %v2912_v17, %v2806_v10  ;;  %v3843_v20 = vpop.f32.mrb[17].mxu0  ;;  %v3863_v21 = vpop.f32.mrb[21].mxu1 }
 0x44f   : > { %v2915_v22 = vpop.f32.mrb[18].mxu0  ;;  %v3023_v23 = vpop.f32.mrb[22].mxu1 }
 0x450   : > { %v3026_v24 = vadd.f32 %v3020_v18, %v2918_v19  ;;  %v3844_v25 = vpop.f32.mrb[19].mxu0  ;;  %v3864_v26 = vpop.f32.mrb[23].mxu1 }
 0x46d   : > { %v3128_v27 = vpop.f32.mrb[20].mxu0 }
 0x46e   : > { %v3134_v29 = vadd.f32 %v3128_v27, %v3026_v24  ;;  %v3883_v30 = vpop.f32.mrb[21].mxu0 }
 0x46f   : > { %v3131_v31 = vpop.f32.mrb[22].mxu0 }
 0x470   : > { %v3136_v32 = vadd.f32 %v3135_v28, %v3134_v29  ;;  %v3884_v33 = vpop.f32.mrb[23].mxu0 }
 0x472   : > { %v3137_v34 = vmax.f32 %v3136_v32, 0.0 }
 0x474   : > { %v3138_v35 = vpack.c.bf16 %v3137_v34, %v3137_v34 }
 0x476   : > { %3902 = vmatmul.mubr.bf16.vlgmr.msra.gmra.mrb[24].mxu1 %v3138_v35 }
 0x549   : > { %v3238_v40 = vpop.f32.mrb[24].mxu1 }
 0x54a   : > { %v3239_v41 = vadd.f32 %v3238_v40, %v3155_v39  ;;  %v3903_v42 = vpop.f32.mrb[25].mxu1 }
 0x54b   : > { %v3241_v43 = vpop.f32.mrb[26].mxu1 }
 0x54c   : > { %v3244_v44 = vmax.f32 %v3239_v41, 0.0  ;;  %v3904_v45 = vpop.f32.mrb[27].mxu1 }
 0x54e   : > { %v3245_v38 = vpack.c.bf16 %v3244_v44, %v3244_v44 }
 0x550   : > { %3922 = vmatmul.mubr.bf16.vlgmr.msra.gmra.mrb[24].mxu0 %v3245_v38 }
 0x623   : > { %v3345_v46 = vpop.f32.mrb[24].mxu0 }
 0x624   : > { %v3346_v47 = vadd.f32 %v3345_v46, %v3262_v58  ;;  %v3923_v48 = vpop.f32.mrb[25].mxu0 }
 0x625   : > { %v3348_v49 = vpop.f32.mrb[26].mxu0 }
 0x626   : > { %3351 = vst [vmem:[%s437_s23] sm:$0x1] %v3346_v47  ;;  %v3924_v50 = vpop.f32.mrb[27].mxu0 }
 0x627   : > { %4443 = shalt.err (!%p4440_p0)
}
 0x628   : > { %s4444_s17 = scalar_lea.hbm %s5125_s12, 16  ;;  %s4448_s30 = scalar_lea.hbm %s5178_s11, 32 }
 0x629   : > { %p4445_p6 = scmp.ne.s32.totalorder %s5125_s12, %s4444_s17  ;;  %p4449_p13 = scmp.lt.u32.totalorder %s5125_s12, %s5178_s11 }
 0x62a   : > { %p4450_p12 = scmp.lt.u32.totalorder %s4448_s30, %s4444_s17  ;;  %p4452_p2 = scmp.lt.u32.totalorder %s4444_s17, %s5125_s12 }
 0x62b   : > { %p4446_p9 = pnand %p4445_p6, %p5214_p3 }
 0x62c   : > { %p4451_p1 = por %p4450_p12, %p4449_p13 }
 0x62d   : > { %p4447_p10 = pneg %p4446_p9 }
 0x62e   : > { %p4453_p4 = por %p4452_p2, %p4451_p1 }
 0x630   : > { %p4454_p7 = pnand %p4453_p4, %p4447_p10 }
 0x632   : > { %4457 = shalt.err (!%p4454_p7)
}
 0x633   : > { %4035 = dma.vmem_to_hbm [thread:$0]  (%p5214_p3), %s5127_s19, 16, %s5125_s12, %s3353_s24  }
 0x634 PF: > { %s5215_s22 = sld [smem:[#allocation19_spill]]  ;;  %s5216_s26 = sld [smem:[#allocation17_spill]] }
 0x635   : > { %s5217_s23 = sld [smem:[#allocation22_spill]] }
 0x63a   : > { %p4062_p8 = scmp.ge.s32.totalorder %s5215_s22, 2  ;;  %s3377_s25 = sand.u32 1, %s5216_s26  }
 0x63b   : > { %p5218_p11 = scmp.ne.s32.totalorder %s5217_s23, 0  ;;  %s3378_s16 = scalar_lea.sflag [#allocation6], %s3377_s25 }
 0x63d   : > { %p4051_p5 = pnand %p4062_p8, %p5218_p11 }
 0x63f   : > { %4487 = dma.done.wait (!%p4051_p5), %s3378_s16, 16  }
 0x640   : > { %4489 = vsyncadd (!%p4051_p5), %s3378_s16, 4294967280  ;;  %s5219_s20 = sld [smem:[#allocation20_spill]]  ;;  %s5220_s21 = sld [smem:[#allocation18_spill]] }
 0x641   : > { %s5221_s19 = sld [smem:[#allocation21_spill]]  ;;  %s5222_s17 = smov %s4496_s18 }
 0x646   : > { %p24_p0 = scmp.ge.s32.totalorder %s5219_s20, 4   ;;  %s5223_s18 = smov %s5220_s21 }
 0x648   :  { %26 = sbr.rel (!%p24_p0) target bundleno = 8 (0x8), region = 132 }
 0x64f   :  { %3382 = vsyncpa [#allocation5], 1 }
 0x650   :  { %3384 = vsyncpa [#allocation5 + $0x1], 1 }
 0x651   :  { %3385 = vsyncpa [#allocation8], 1 }
 0x652   :  { %3386 = vsyncpa [#allocation11], 1 }
 0x653   :  { %3387 = vsyncpa [#allocation6], 1 }
 0x654   :  { %3389 = vsyncpa [#allocation6 + $0x1], 1 }

</bundles_post_ra>
